<compile_context>
chip_gen: v5e
topology: v5e:2x2
jax: 0.10.0
libtpu: 0.0.40
codegen_flags: <defaults>
</compile_context>

<pallas_src>
import functools
import math

import jax
import jax.numpy as jnp
from jax.experimental import pallas as pl
from jax.experimental.pallas import tpu as pltpu


# ----------------------------------------------------------------------------
# Kernel
# ----------------------------------------------------------------------------
def _layer_norm(x, g, b, eps=1e-5):
    mu = jnp.mean(x, axis=-1, keepdims=True)
    var = jnp.mean((x - mu) ** 2, axis=-1, keepdims=True)
    return (x - mu) * jax.lax.rsqrt(var + eps) * g + b


def _mm(a_bf16, w_bf16):
    # MXU matmul: bf16 operands, f32 accumulation.
    return jnp.dot(a_bf16, w_bf16, preferred_element_type=jnp.float32)


def transformer_enc_mlp_kernel(
    x_ref, pe_ref,
    emb_w_ref, emb_b_ref,
    qkv_w_ref, qkv_b_ref, o_w_ref, o_b_ref,
    ln1_g_ref, ln1_b_ref, ln2_g_ref, ln2_b_ref,
    ff1_w_ref, ff1_b_ref, ff2_w_ref, ff2_b_ref,
    dec1_w_ref, dec1_b_ref, dec2_w_ref, dec2_b_ref,
    out_ref,
    *, num_layers, num_heads, seq_len,
):
    bf16 = jnp.bfloat16
    BT, _ = x_ref.shape
    T = seq_len
    BB = BT // T
    D = emb_w_ref.shape[1]
    hd = D // num_heads

    # emb_net (Linear; Dropout == identity) + positional encoding, directly on
    # the flat [BB*T, D] slab (PE is pre-tiled by the wrapper -> no reshapes).
    h = _mm(x_ref[...].astype(bf16), emb_w_ref[...]) + emb_b_ref[...] + pe_ref[...]
    hb = h.astype(bf16)                                   # bf16 shadow (MXU operand)

    # Static (fully unrolled) layer / head loops -- L and H are tiny.
    for l in range(num_layers):
        # ----- multi-head self-attention -----
        # 1/sqrt(hd) is pre-folded into the Q columns of qkv_w / qkv_b.
        qkv = _mm(hb, qkv_w_ref[l]) + qkv_b_ref[l]        # [BT, 3D] f32
        qkvb = qkv.astype(bf16).reshape(BB, T, 3 * D)     # single cast of qkv

        ctx_heads = []
        for hh in range(num_heads):
            q = qkvb[:, :, hh * hd:(hh + 1) * hd]                  # [BB,T,hd]
            k = qkvb[:, :, D + hh * hd:D + (hh + 1) * hd]
            v = qkvb[:, :, 2 * D + hh * hd:2 * D + (hh + 1) * hd]

            s = jnp.einsum("bqd,bkd->bqk", q, k,
                           preferred_element_type=jnp.float32)     # [BB,T,T]
            s = s - jnp.max(s, axis=-1, keepdims=True)
            p = jnp.exp(s)
            p = p * pl.reciprocal(jnp.sum(p, axis=-1, keepdims=True), approx=True)
            ctx_heads.append(
                jnp.einsum("bqk,bkd->bqd", p.astype(bf16), v,
                           preferred_element_type=jnp.float32))    # [BB,T,hd]

        # concat-head lane order, then ONE [BT,D] x [D,D] output projection.
        ctx = jnp.concatenate(ctx_heads, axis=-1).reshape(BT, D)
        attn = _mm(ctx.astype(bf16), o_w_ref[l]) + o_b_ref[l]

        # residual + post-norm (f32 elementwise)
        h = _layer_norm(h + attn, ln1_g_ref[l], ln1_b_ref[l])
        hb = h.astype(bf16)

        # ----- feed-forward (Linear -> ReLU -> Linear), residual + post-norm -----
        ff = jnp.maximum(_mm(hb, ff1_w_ref[l]) + ff1_b_ref[l], 0.0)
        ff = _mm(ff.astype(bf16), ff2_w_ref[l]) + ff2_b_ref[l]
        h = _layer_norm(h + ff, ln2_g_ref[l], ln2_b_ref[l])
        hb = h.astype(bf16)

    # mean over the sequence dim (1/T is folded into dec1_w -> plain sum here)
    feat = jnp.sum(h.reshape(BB, T, D), axis=1)           # [BB, D]

    # decoder MLP: Linear -> (Dropout == identity) -> ReLU -> Linear
    # (dec2 is zero-padded to a lane-dense 128-column output by the wrapper)
    d1 = jnp.maximum(_mm(feat.astype(bf16), dec1_w_ref[...]) + dec1_b_ref[...], 0.0)
    d2 = _mm(d1.astype(bf16), dec2_w_ref[...]) + dec2_b_ref[...]   # [BB, OC]
    out_ref[0] = d2


# ----------------------------------------------------------------------------
# Wrapper (glue: PE table, batch blocking, constant folding, BlockSpecs)
# ----------------------------------------------------------------------------
def positional_encoding_table(seq_len, d_model):
    position = jnp.arange(seq_len, dtype=jnp.float32)[:, None]
    div_term = jnp.exp(jnp.arange(0, d_model, 2, dtype=jnp.float32)
                       * (-math.log(10000.0) / d_model))
    pe = jnp.zeros((seq_len, d_model), jnp.float32)
    pe = pe.at[:, 0::2].set(jnp.sin(position * div_term))
    pe = pe.at[:, 1::2].set(jnp.cos(position * div_term))
    return pe


def _choose_batch_block(B, T):
    """Pick the batch block BB and padded batch size.

    Keeps BB*T a multiple of 8 (f32 sublane rows) while padding the batch as
    little as possible.  For bigger batches it targets ~128-512 matmul rows per
    grid step and >= 2 grid steps so the "parallel" axis can shard across the
    two v7x TensorCores (no-op on the single-TC v5e/v6e).
    """
    gran = max(1, 8 // math.gcd(T, 8))          # BB granularity for sublane rows
    b_min = -(-B // gran) * gran                # B rounded up to granularity
    if b_min * T <= 512:
        bb = b_min
        half = b_min // 2
        if b_min * T >= 256 and half >= gran and half % gran == 0:
            bb = half                           # 2 grid steps -> v7x dual-TC
    else:
        bb = max(gran, (max(1, 256 // T) // gran) * gran)
    b_pad = -(-B // bb) * bb
    return bb, b_pad


def transformer_enc_mlp(x, params, cfg):
    B, T, Din = x.shape
    D = cfg["d_model"]
    L = cfg["num_layers"]
    H = cfg["num_heads"]
    P = cfg["prediction_len"]
    hd = D // H
    inter = D // 2

    BB, B_pad = _choose_batch_block(B, T)
    G = B_pad // BB
    if B_pad != B:
        x = jnp.pad(x, ((0, B_pad - B), (0, 0), (0, 0)))
    x_flat = x.reshape(B_pad * T, Din)

    # Pre-tiled PE for the flat [BB*T, D] slab (removes in-kernel reshapes).
    pe_tiled = jnp.tile(positional_encoding_table(T, D), (BB, 1))

    (emb_w, emb_b, qkv_w, qkv_b, o_w, o_b,
     ln1_g, ln1_b, ln2_g, ln2_b,
     ff1_w, ff1_b, ff2_w, ff2_b,
     dec1_w, dec1_b, dec2_w, dec2_b) = params

    # Constant folding: 1/sqrt(hd) into the Q projection, 1/T into dec1_w.
    q_scale = 1.0 / math.sqrt(hd)
    qkv_w = qkv_w.at[:, :, :D].multiply(q_scale)
    qkv_b = qkv_b.at[:, :, :D].multiply(q_scale)
    dec1_w = dec1_w * (1.0 / T)

    # Lane-dense decoder output: pad output columns to a multiple of 128.
    OC = -(-(2 * P) // 128) * 128
    dec2_w = jnp.pad(dec2_w, ((0, 0), (0, OC - 2 * P)))
    dec2_b = jnp.pad(dec2_b, ((0, 0), (0, OC - 2 * P)))

    def bf(w):  # matmul weights -> bf16 MXU operands (halves weight DMA too)
        return w.astype(jnp.bfloat16)

    kernel = functools.partial(transformer_enc_mlp_kernel,
                               num_layers=L, num_heads=H, seq_len=T)

    def full(shape):
        nd = len(shape)
        return pl.BlockSpec(shape, lambda b, _nd=nd: (0,) * _nd)

    # All L layers' weights stay resident (tiny at D=32, L=2).
    # TODO(synk): stream per-layer (layer grid axis / vmem_limit_bytes) if this
    #             model is ever scaled up -- v7x only has 64 MiB VMEM.
    in_specs = [
        pl.BlockSpec((BB * T, Din), lambda b: (b, 0)),    # x (flat batch block)
        full((BB * T, D)),                                # pe (pre-tiled)
        full((Din, D)), full((1, D)),                     # emb
        full((L, D, 3 * D)), full((L, 1, 3 * D)),         # qkv proj
        full((L, D, D)), full((L, 1, D)),                 # out proj
        full((L, 1, D)), full((L, 1, D)),                 # ln1 gamma/beta
        full((L, 1, D)), full((L, 1, D)),                 # ln2 gamma/beta
        full((L, D, 2 * D)), full((L, 1, 2 * D)),         # ff1
        full((L, 2 * D, D)), full((L, 1, D)),             # ff2
        full((D, inter)), full((1, inter)),               # decoder linear 1
        full((inter, OC)), full((1, OC)),                 # decoder linear 2 (padded)
    ]

    out = pl.pallas_call(
        kernel,
        out_shape=jax.ShapeDtypeStruct((G, BB, OC), jnp.float32),
        grid=(G,),
        in_specs=in_specs,
        out_specs=pl.BlockSpec((1, BB, OC), lambda b: (b, 0, 0)),
        compiler_params=pltpu.CompilerParams(
            dimension_semantics=("parallel",)),
    )(x_flat, pe_tiled,
      bf(emb_w), emb_b, bf(qkv_w), qkv_b, bf(o_w), o_b,
      ln1_g, ln1_b, ln2_g, ln2_b,
      bf(ff1_w), ff1_b, bf(ff2_w), ff2_b,
      bf(dec1_w), dec1_b, bf(dec2_w), dec2_b)

    out = out.reshape(B_pad, OC)[:B, :2 * P]
    return out.reshape(B, -1, 2)                          # (bs, prediction_len, 2)


# ----------------------------------------------------------------------------
# Deterministic parameter init (xavier_uniform for dim>1, zeros for biases,
# ones/zeros for LayerNorm -- mirrors the module's _reset_parameters)
# ----------------------------------------------------------------------------
def make_params(key, cfg, input_dims):
    D = cfg["d_model"]
    L = cfg["num_layers"]
    P = cfg["prediction_len"]
    inter = D // 2

    def xavier(k, shape):
        fan_in, fan_out = shape[-2], shape[-1]
        bound = math.sqrt(6.0 / (fan_in + fan_out))
        return jax.random.uniform(k, shape, jnp.float32, -bound, bound)

    ks = jax.random.split(key, 8)
    emb_w = xavier(ks[0], (input_dims, D))
    emb_b = jnp.zeros((1, D), jnp.float32)
    qkv_w = xavier(ks[1], (L, D, 3 * D))
    qkv_b = jnp.zeros((L, 1, 3 * D), jnp.float32)
    o_w = xavier(ks[2], (L, D, D))
    o_b = jnp.zeros((L, 1, D), jnp.float32)
    ln1_g = jnp.ones((L, 1, D), jnp.float32)
    ln1_b = jnp.zeros((L, 1, D), jnp.float32)
    ln2_g = jnp.ones((L, 1, D), jnp.float32)
    ln2_b = jnp.zeros((L, 1, D), jnp.float32)
    ff1_w = xavier(ks[3], (L, D, 2 * D))
    ff1_b = jnp.zeros((L, 1, 2 * D), jnp.float32)
    ff2_w = xavier(ks[4], (L, 2 * D, D))
    ff2_b = jnp.zeros((L, 1, D), jnp.float32)
    dec1_w = xavier(ks[5], (D, inter))
    dec1_b = jnp.zeros((1, inter), jnp.float32)
    dec2_w = xavier(ks[6], (inter, 2 * P))
    dec2_b = jnp.zeros((1, 2 * P), jnp.float32)

    return (emb_w, emb_b, qkv_w, qkv_b, o_w, o_b,
            ln1_g, ln1_b, ln2_g, ln2_b,
            ff1_w, ff1_b, ff2_w, ff2_b,
            dec1_w, dec1_b, dec2_w, dec2_b)


# ----------------------------------------------------------------------------
# Pure-JAX reference (same math, all f32, no folding) for a sanity check
# ----------------------------------------------------------------------------
def reference_forward(x, params, cfg):
    (emb_w, emb_b, qkv_w, qkv_b, o_w, o_b,
     ln1_g, ln1_b, ln2_g, ln2_b,
     ff1_w, ff1_b, ff2_w, ff2_b,
     dec1_w, dec1_b, dec2_w, dec2_b) = params
    B, T, _ = x.shape
    D = cfg["d_model"]
    H = cfg["num_heads"]
    hd = D // H
    pe = positional_encoding_table(T, D)

    def ln(v, g, b):
        mu = v.mean(-1, keepdims=True)
        var = ((v - mu) ** 2).mean(-1, keepdims=True)
        return (v - mu) / jnp.sqrt(var + 1e-5) * g + b

    h = x @ emb_w + emb_b + pe[None]
    for l in range(cfg["num_layers"]):
        qkv = h @ qkv_w[l] + qkv_b[l]
        q, k, v = qkv[..., :D], qkv[..., D:2 * D], qkv[..., 2 * D:]
        outs = []
        for i in range(H):
            sl = slice(i * hd, (i + 1) * hd)
            s = jnp.einsum("btd,bsd->bts", q[..., sl], k[..., sl]) / math.sqrt(hd)
            p = jax.nn.softmax(s, axis=-1)
            outs.append(jnp.einsum("bts,bsd->btd", p, v[..., sl]))
        attn = jnp.concatenate(outs, axis=-1) @ o_w[l] + o_b[l]
        h = ln(h + attn, ln1_g[l], ln1_b[l])
        ff = jnp.maximum(h @ ff1_w[l] + ff1_b[l], 0.0) @ ff2_w[l] + ff2_b[l]
        h = ln(h + ff, ln2_g[l], ln2_b[l])
    feat = h.mean(axis=1)
    out = jnp.maximum(feat @ dec1_w + dec1_b, 0.0) @ dec2_w + dec2_b
    return out.reshape(B, -1, 2)


if __name__ == "__main__":
    cfg = {"d_model": 32, "dropout": 0.1, "num_layers": 2,
           "num_heads": 2, "prediction_len": 4}
    input_type = ["trajectories"]          # -> input_dims = 2
    input_dims = 2 * len(input_type)

    B, T = 2, 8
    key = jax.random.PRNGKey(0)
    k_x, k_p = jax.random.split(key)
    # equivalent of torch.cat([f['scl_obs'] ...], dim=-1): [bs, seq, 2]
    x = jax.random.normal(k_x, (B, T, input_dims), jnp.float32)
    params = make_params(k_p, cfg, input_dims)

    out = transformer_enc_mlp(x, params, cfg)
    out = jax.block_until_ready(out)

    ref = reference_forward(x, params, cfg)
    assert out.shape == (B, cfg["prediction_len"], 2)
    assert jnp.allclose(out, ref, rtol=2e-2, atol=2e-2), "mismatch vs reference"

    print("KERNEL_OK")
</pallas_src>

<mosaic_0001>
module attributes {stable_mosaic.version = 11 : i64} {
  func.func @transformer_enc_mlp_kernel(%arg0: i32, %arg1: memref<16x2xf32, #tpu.memory_space<vmem>>, %arg2: memref<16x32xf32, #tpu.memory_space<vmem>>, %arg3: memref<2x32xbf16, #tpu.memory_space<vmem>>, %arg4: memref<1x32xf32, #tpu.memory_space<vmem>>, %arg5: memref<2x32x96xbf16, #tpu.memory_space<vmem>>, %arg6: memref<2x1x96xf32, #tpu.memory_space<vmem>>, %arg7: memref<2x32x32xbf16, #tpu.memory_space<vmem>>, %arg8: memref<2x1x32xf32, #tpu.memory_space<vmem>>, %arg9: memref<2x1x32xf32, #tpu.memory_space<vmem>>, %arg10: memref<2x1x32xf32, #tpu.memory_space<vmem>>, %arg11: memref<2x1x32xf32, #tpu.memory_space<vmem>>, %arg12: memref<2x1x32xf32, #tpu.memory_space<vmem>>, %arg13: memref<2x32x64xbf16, #tpu.memory_space<vmem>>, %arg14: memref<2x1x64xf32, #tpu.memory_space<vmem>>, %arg15: memref<2x64x32xbf16, #tpu.memory_space<vmem>>, %arg16: memref<2x1x32xf32, #tpu.memory_space<vmem>>, %arg17: memref<32x16xbf16, #tpu.memory_space<vmem>>, %arg18: memref<1x16xf32, #tpu.memory_space<vmem>>, %arg19: memref<16x128xbf16, #tpu.memory_space<vmem>>, %arg20: memref<1x128xf32, #tpu.memory_space<vmem>>, %arg21: memref<1x2x128xf32, #tpu.memory_space<vmem>>) attributes {dimension_semantics = [#tpu.dimension_semantics<parallel>], iteration_bounds = array<i64: 1>, scalar_prefetch = 0 : i64, scratch_operands = 0 : i64, tpu.core_type = #tpu.core_type<tc>, window_params = [{transform_indices = @transform_0, window_bounds = array<i64: 16, 2>}, {pipeline_mode = #tpu.pipeline_mode<synchronous>, transform_indices = @transform_1, window_bounds = array<i64: 16, 32>}, {pipeline_mode = #tpu.pipeline_mode<synchronous>, transform_indices = @transform_2, window_bounds = array<i64: 2, 32>}, {pipeline_mode = #tpu.pipeline_mode<synchronous>, transform_indices = @transform_3, window_bounds = array<i64: 1, 32>}, {pipeline_mode = #tpu.pipeline_mode<synchronous>, transform_indices = @transform_4, window_bounds = array<i64: 2, 32, 96>}, {pipeline_mode = #tpu.pipeline_mode<synchronous>, transform_indices = @transform_5, window_bounds = array<i64: 2, 1, 96>}, {pipeline_mode = #tpu.pipeline_mode<synchronous>, transform_indices = @transform_6, window_bounds = array<i64: 2, 32, 32>}, {pipeline_mode = #tpu.pipeline_mode<synchronous>, transform_indices = @transform_7, window_bounds = array<i64: 2, 1, 32>}, {pipeline_mode = #tpu.pipeline_mode<synchronous>, transform_indices = @transform_8, window_bounds = array<i64: 2, 1, 32>}, {pipeline_mode = #tpu.pipeline_mode<synchronous>, transform_indices = @transform_9, window_bounds = array<i64: 2, 1, 32>}, {pipeline_mode = #tpu.pipeline_mode<synchronous>, transform_indices = @transform_10, window_bounds = array<i64: 2, 1, 32>}, {pipeline_mode = #tpu.pipeline_mode<synchronous>, transform_indices = @transform_11, window_bounds = array<i64: 2, 1, 32>}, {pipeline_mode = #tpu.pipeline_mode<synchronous>, transform_indices = @transform_12, window_bounds = array<i64: 2, 32, 64>}, {pipeline_mode = #tpu.pipeline_mode<synchronous>, transform_indices = @transform_13, window_bounds = array<i64: 2, 1, 64>}, {pipeline_mode = #tpu.pipeline_mode<synchronous>, transform_indices = @transform_14, window_bounds = array<i64: 2, 64, 32>}, {pipeline_mode = #tpu.pipeline_mode<synchronous>, transform_indices = @transform_15, window_bounds = array<i64: 2, 1, 32>}, {pipeline_mode = #tpu.pipeline_mode<synchronous>, transform_indices = @transform_16, window_bounds = array<i64: 32, 16>}, {pipeline_mode = #tpu.pipeline_mode<synchronous>, transform_indices = @transform_17, window_bounds = array<i64: 1, 16>}, {pipeline_mode = #tpu.pipeline_mode<synchronous>, transform_indices = @transform_18, window_bounds = array<i64: 16, 128>}, {pipeline_mode = #tpu.pipeline_mode<synchronous>, transform_indices = @transform_19, window_bounds = array<i64: 1, 128>}, {transform_indices = @transform_20, window_bounds = array<i64: 1, 2, 128>}]} {
    %c0 = arith.constant 0 : index
    %c0_0 = arith.constant 0 : index
    %0 = vector.load %arg1[%c0, %c0_0] : memref<16x2xf32, #tpu.memory_space<vmem>>, vector<16x2xf32>
    %1 = arith.truncf %0 : vector<16x2xf32> to vector<16x2xbf16>
    %c0_1 = arith.constant 0 : index
    %c0_2 = arith.constant 0 : index
    %2 = vector.load %arg3[%c0_1, %c0_2] : memref<2x32xbf16, #tpu.memory_space<vmem>>, vector<2x32xbf16>
    %cst = arith.constant dense<0.000000e+00> : vector<16x32xf32>
    %3 = tpu.matmul %1, %2, %cst {dimension_numbers = #tpu.dot_dimension_numbers<[1], [0], [0], [1], [0, 0, 1, 1], [], []>} : vector<16x2xbf16>, vector<2x32xbf16>, vector<16x32xf32> -> vector<16x32xf32>
    %c0_3 = arith.constant 0 : index
    %c0_4 = arith.constant 0 : index
    %4 = vector.load %arg4[%c0_3, %c0_4] : memref<1x32xf32, #tpu.memory_space<vmem>>, vector<1x32xf32>
    %5 = vector.broadcast %4 : vector<1x32xf32> to vector<16x32xf32>
    %6 = arith.addf %3, %5 : vector<16x32xf32>
    %c0_5 = arith.constant 0 : index
    %c0_6 = arith.constant 0 : index
    %7 = vector.load %arg2[%c0_5, %c0_6] : memref<16x32xf32, #tpu.memory_space<vmem>>, vector<16x32xf32>
    %8 = arith.addf %6, %7 : vector<16x32xf32>
    %9 = arith.truncf %8 : vector<16x32xf32> to vector<16x32xbf16>
    %c0_7 = arith.constant 0 : index
    %c0_8 = arith.constant 0 : index
    %c0_9 = arith.constant 0 : index
    %10 = vector.load %arg5[%c0_7, %c0_8, %c0_9] : memref<2x32x96xbf16, #tpu.memory_space<vmem>>, vector<1x32x96xbf16>
    %11 = vector.shape_cast %10 : vector<1x32x96xbf16> to vector<32x96xbf16>
    %cst_10 = arith.constant dense<0.000000e+00> : vector<16x96xf32>
    %12 = tpu.matmul %9, %11, %cst_10 {dimension_numbers = #tpu.dot_dimension_numbers<[1], [0], [0], [1], [0, 0, 1, 1], [], []>} : vector<16x32xbf16>, vector<32x96xbf16>, vector<16x96xf32> -> vector<16x96xf32>
    %c0_11 = arith.constant 0 : index
    %c0_12 = arith.constant 0 : index
    %c0_13 = arith.constant 0 : index
    %13 = vector.load %arg6[%c0_11, %c0_12, %c0_13] : memref<2x1x96xf32, #tpu.memory_space<vmem>>, vector<1x1x96xf32>
    %14 = vector.shape_cast %13 : vector<1x1x96xf32> to vector<1x96xf32>
    %15 = vector.broadcast %14 : vector<1x96xf32> to vector<16x96xf32>
    %16 = arith.addf %12, %15 : vector<16x96xf32>
    %17 = arith.truncf %16 : vector<16x96xf32> to vector<16x96xbf16>
    %18 = vector.shape_cast %17 : vector<16x96xbf16> to vector<2x8x96xbf16>
    %19 = vector.extract_strided_slice %18 {offsets = [0, 0, 0], sizes = [2, 8, 16], strides = [1, 1, 1]} : vector<2x8x96xbf16> to vector<2x8x16xbf16>
    %20 = vector.extract_strided_slice %18 {offsets = [0, 0, 32], sizes = [2, 8, 16], strides = [1, 1, 1]} : vector<2x8x96xbf16> to vector<2x8x16xbf16>
    %21 = vector.extract_strided_slice %18 {offsets = [0, 0, 64], sizes = [2, 8, 16], strides = [1, 1, 1]} : vector<2x8x96xbf16> to vector<2x8x16xbf16>
    "tpu.trace_start"() <{level = 10 : i32, message = "bqd,bkd->bqk"}> : () -> ()
    %cst_14 = arith.constant dense<0.000000e+00> : vector<2x8x8xf32>
    %22 = tpu.matmul %19, %20, %cst_14 {dimension_numbers = #tpu.dot_dimension_numbers<[2], [2], [1], [1], [0, 0, 0, 1, 1, 1], [0], [0]>} : vector<2x8x16xbf16>, vector<2x8x16xbf16>, vector<2x8x8xf32> -> vector<2x8x8xf32>
    "tpu.trace_stop"() : () -> ()
    %cst_15 = arith.constant dense<0xFF800000> : vector<2x8xf32>
    %23 = vector.multi_reduction <maximumf>, %22, %cst_15 [2] : vector<2x8x8xf32> to vector<2x8xf32>
    %24 = vector.shape_cast %23 : vector<2x8xf32> to vector<2x8x1xf32>
    %25 = vector.broadcast %24 : vector<2x8x1xf32> to vector<2x8x8xf32>
    %26 = arith.subf %22, %25 : vector<2x8x8xf32>
    %27 = math.exp %26 : vector<2x8x8xf32>
    %cst_16 = arith.constant dense<0.000000e+00> : vector<2x8xf32>
    %28 = vector.multi_reduction <add>, %27, %cst_16 [2] : vector<2x8x8xf32> to vector<2x8xf32>
    %29 = vector.shape_cast %28 : vector<2x8xf32> to vector<2x8x1xf32>
    %30 = tpu.reciprocal %29 {approx = true} : vector<2x8x1xf32> -> vector<2x8x1xf32>
    %31 = vector.broadcast %30 : vector<2x8x1xf32> to vector<2x8x8xf32>
    %32 = arith.mulf %27, %31 : vector<2x8x8xf32>
    %33 = arith.truncf %32 : vector<2x8x8xf32> to vector<2x8x8xbf16>
    "tpu.trace_start"() <{level = 10 : i32, message = "bqk,bkd->bqd"}> : () -> ()
    %cst_17 = arith.constant dense<0.000000e+00> : vector<2x8x16xf32>
    %34 = tpu.matmul %33, %21, %cst_17 {dimension_numbers = #tpu.dot_dimension_numbers<[2], [1], [1], [2], [0, 0, 0, 1, 1, 2], [0], [0]>} : vector<2x8x8xbf16>, vector<2x8x16xbf16>, vector<2x8x16xf32> -> vector<2x8x16xf32>
    "tpu.trace_stop"() : () -> ()
    %35 = vector.extract_strided_slice %18 {offsets = [0, 0, 16], sizes = [2, 8, 16], strides = [1, 1, 1]} : vector<2x8x96xbf16> to vector<2x8x16xbf16>
    %36 = vector.extract_strided_slice %18 {offsets = [0, 0, 48], sizes = [2, 8, 16], strides = [1, 1, 1]} : vector<2x8x96xbf16> to vector<2x8x16xbf16>
    %37 = vector.extract_strided_slice %18 {offsets = [0, 0, 80], sizes = [2, 8, 16], strides = [1, 1, 1]} : vector<2x8x96xbf16> to vector<2x8x16xbf16>
    "tpu.trace_start"() <{level = 10 : i32, message = "bqd,bkd->bqk"}> : () -> ()
    %cst_18 = arith.constant dense<0.000000e+00> : vector<2x8x8xf32>
    %38 = tpu.matmul %35, %36, %cst_18 {dimension_numbers = #tpu.dot_dimension_numbers<[2], [2], [1], [1], [0, 0, 0, 1, 1, 1], [0], [0]>} : vector<2x8x16xbf16>, vector<2x8x16xbf16>, vector<2x8x8xf32> -> vector<2x8x8xf32>
    "tpu.trace_stop"() : () -> ()
    %cst_19 = arith.constant dense<0xFF800000> : vector<2x8xf32>
    %39 = vector.multi_reduction <maximumf>, %38, %cst_19 [2] : vector<2x8x8xf32> to vector<2x8xf32>
    %40 = vector.shape_cast %39 : vector<2x8xf32> to vector<2x8x1xf32>
    %41 = vector.broadcast %40 : vector<2x8x1xf32> to vector<2x8x8xf32>
    %42 = arith.subf %38, %41 : vector<2x8x8xf32>
    %43 = math.exp %42 : vector<2x8x8xf32>
    %cst_20 = arith.constant dense<0.000000e+00> : vector<2x8xf32>
    %44 = vector.multi_reduction <add>, %43, %cst_20 [2] : vector<2x8x8xf32> to vector<2x8xf32>
    %45 = vector.shape_cast %44 : vector<2x8xf32> to vector<2x8x1xf32>
    %46 = tpu.reciprocal %45 {approx = true} : vector<2x8x1xf32> -> vector<2x8x1xf32>
    %47 = vector.broadcast %46 : vector<2x8x1xf32> to vector<2x8x8xf32>
    %48 = arith.mulf %43, %47 : vector<2x8x8xf32>
    %49 = arith.truncf %48 : vector<2x8x8xf32> to vector<2x8x8xbf16>
    "tpu.trace_start"() <{level = 10 : i32, message = "bqk,bkd->bqd"}> : () -> ()
    %cst_21 = arith.constant dense<0.000000e+00> : vector<2x8x16xf32>
    %50 = tpu.matmul %49, %37, %cst_21 {dimension_numbers = #tpu.dot_dimension_numbers<[2], [1], [1], [2], [0, 0, 0, 1, 1, 2], [0], [0]>} : vector<2x8x8xbf16>, vector<2x8x16xbf16>, vector<2x8x16xf32> -> vector<2x8x16xf32>
    "tpu.trace_stop"() : () -> ()
    %51 = tpu.concatenate %34, %50 in 2 : vector<2x8x16xf32>, vector<2x8x16xf32> -> vector<2x8x32xf32>
    %52 = vector.shape_cast %51 : vector<2x8x32xf32> to vector<16x32xf32>
    %53 = arith.truncf %52 : vector<16x32xf32> to vector<16x32xbf16>
    %c0_22 = arith.constant 0 : index
    %c0_23 = arith.constant 0 : index
    %c0_24 = arith.constant 0 : index
    %54 = vector.load %arg7[%c0_22, %c0_23, %c0_24] : memref<2x32x32xbf16, #tpu.memory_space<vmem>>, vector<1x32x32xbf16>
    %55 = vector.shape_cast %54 : vector<1x32x32xbf16> to vector<32x32xbf16>
    %cst_25 = arith.constant dense<0.000000e+00> : vector<16x32xf32>
    %56 = tpu.matmul %53, %55, %cst_25 {dimension_numbers = #tpu.dot_dimension_numbers<[1], [0], [0], [1], [0, 0, 1, 1], [], []>} : vector<16x32xbf16>, vector<32x32xbf16>, vector<16x32xf32> -> vector<16x32xf32>
    %c0_26 = arith.constant 0 : index
    %c0_27 = arith.constant 0 : index
    %c0_28 = arith.constant 0 : index
    %57 = vector.load %arg8[%c0_26, %c0_27, %c0_28] : memref<2x1x32xf32, #tpu.memory_space<vmem>>, vector<1x1x32xf32>
    %58 = vector.shape_cast %57 : vector<1x1x32xf32> to vector<1x32xf32>
    %59 = vector.broadcast %58 : vector<1x32xf32> to vector<16x32xf32>
    %60 = arith.addf %56, %59 : vector<16x32xf32>
    %61 = arith.addf %8, %60 : vector<16x32xf32>
    %c0_29 = arith.constant 0 : index
    %c0_30 = arith.constant 0 : index
    %c0_31 = arith.constant 0 : index
    %62 = vector.load %arg9[%c0_29, %c0_30, %c0_31] : memref<2x1x32xf32, #tpu.memory_space<vmem>>, vector<1x1x32xf32>
    %63 = vector.shape_cast %62 : vector<1x1x32xf32> to vector<1x32xf32>
    %c0_32 = arith.constant 0 : index
    %c0_33 = arith.constant 0 : index
    %c0_34 = arith.constant 0 : index
    %64 = vector.load %arg10[%c0_32, %c0_33, %c0_34] : memref<2x1x32xf32, #tpu.memory_space<vmem>>, vector<1x1x32xf32>
    %65 = vector.shape_cast %64 : vector<1x1x32xf32> to vector<1x32xf32>
    %cst_35 = arith.constant dense<0.000000e+00> : vector<16xf32>
    %66 = vector.multi_reduction <add>, %61, %cst_35 [1] : vector<16x32xf32> to vector<16xf32>
    %67 = vector.shape_cast %66 : vector<16xf32> to vector<16x1xf32>
    %cst_36 = arith.constant 3.200000e+01 : f32
    %68 = vector.broadcast %cst_36 : f32 to vector<16x1xf32>
    %69 = arith.divf %67, %68 : vector<16x1xf32>
    %70 = vector.broadcast %69 : vector<16x1xf32> to vector<16x32xf32>
    %71 = arith.subf %61, %70 : vector<16x32xf32>
    %72 = arith.mulf %71, %71 : vector<16x32xf32>
    %cst_37 = arith.constant dense<0.000000e+00> : vector<16xf32>
    %73 = vector.multi_reduction <add>, %72, %cst_37 [1] : vector<16x32xf32> to vector<16xf32>
    %74 = vector.shape_cast %73 : vector<16xf32> to vector<16x1xf32>
    %cst_38 = arith.constant 3.200000e+01 : f32
    %75 = vector.broadcast %cst_38 : f32 to vector<16x1xf32>
    %76 = arith.divf %74, %75 : vector<16x1xf32>
    %77 = vector.broadcast %69 : vector<16x1xf32> to vector<16x32xf32>
    %78 = arith.subf %61, %77 : vector<16x32xf32>
    %cst_39 = arith.constant 9.99999974E-6 : f32
    %79 = vector.broadcast %cst_39 : f32 to vector<16x1xf32>
    %80 = arith.addf %76, %79 : vector<16x1xf32>
    %81 = math.rsqrt %80 : vector<16x1xf32>
    %82 = vector.broadcast %81 : vector<16x1xf32> to vector<16x32xf32>
    %83 = arith.mulf %78, %82 : vector<16x32xf32>
    %84 = vector.broadcast %63 : vector<1x32xf32> to vector<16x32xf32>
    %85 = arith.mulf %83, %84 : vector<16x32xf32>
    %86 = vector.broadcast %65 : vector<1x32xf32> to vector<16x32xf32>
    %87 = arith.addf %85, %86 : vector<16x32xf32>
    %88 = arith.truncf %87 : vector<16x32xf32> to vector<16x32xbf16>
    %c0_40 = arith.constant 0 : index
    %c0_41 = arith.constant 0 : index
    %c0_42 = arith.constant 0 : index
    %89 = vector.load %arg13[%c0_40, %c0_41, %c0_42] : memref<2x32x64xbf16, #tpu.memory_space<vmem>>, vector<1x32x64xbf16>
    %90 = vector.shape_cast %89 : vector<1x32x64xbf16> to vector<32x64xbf16>
    %cst_43 = arith.constant dense<0.000000e+00> : vector<16x64xf32>
    %91 = tpu.matmul %88, %90, %cst_43 {dimension_numbers = #tpu.dot_dimension_numbers<[1], [0], [0], [1], [0, 0, 1, 1], [], []>} : vector<16x32xbf16>, vector<32x64xbf16>, vector<16x64xf32> -> vector<16x64xf32>
    %c0_44 = arith.constant 0 : index
    %c0_45 = arith.constant 0 : index
    %c0_46 = arith.constant 0 : index
    %92 = vector.load %arg14[%c0_44, %c0_45, %c0_46] : memref<2x1x64xf32, #tpu.memory_space<vmem>>, vector<1x1x64xf32>
    %93 = vector.shape_cast %92 : vector<1x1x64xf32> to vector<1x64xf32>
    %94 = vector.broadcast %93 : vector<1x64xf32> to vector<16x64xf32>
    %95 = arith.addf %91, %94 : vector<16x64xf32>
    %cst_47 = arith.constant 0.000000e+00 : f32
    %96 = vector.broadcast %cst_47 : f32 to vector<16x64xf32>
    %97 = arith.maximumf %95, %96 : vector<16x64xf32>
    %98 = arith.truncf %97 : vector<16x64xf32> to vector<16x64xbf16>
    %c0_48 = arith.constant 0 : index
    %c0_49 = arith.constant 0 : index
    %c0_50 = arith.constant 0 : index
    %99 = vector.load %arg15[%c0_48, %c0_49, %c0_50] : memref<2x64x32xbf16, #tpu.memory_space<vmem>>, vector<1x64x32xbf16>
    %100 = vector.shape_cast %99 : vector<1x64x32xbf16> to vector<64x32xbf16>
    %cst_51 = arith.constant dense<0.000000e+00> : vector<16x32xf32>
    %101 = tpu.matmul %98, %100, %cst_51 {dimension_numbers = #tpu.dot_dimension_numbers<[1], [0], [0], [1], [0, 0, 1, 1], [], []>} : vector<16x64xbf16>, vector<64x32xbf16>, vector<16x32xf32> -> vector<16x32xf32>
    %c0_52 = arith.constant 0 : index
    %c0_53 = arith.constant 0 : index
    %c0_54 = arith.constant 0 : index
    %102 = vector.load %arg16[%c0_52, %c0_53, %c0_54] : memref<2x1x32xf32, #tpu.memory_space<vmem>>, vector<1x1x32xf32>
    %103 = vector.shape_cast %102 : vector<1x1x32xf32> to vector<1x32xf32>
    %104 = vector.broadcast %103 : vector<1x32xf32> to vector<16x32xf32>
    %105 = arith.addf %101, %104 : vector<16x32xf32>
    %106 = arith.addf %87, %105 : vector<16x32xf32>
    %c0_55 = arith.constant 0 : index
    %c0_56 = arith.constant 0 : index
    %c0_57 = arith.constant 0 : index
    %107 = vector.load %arg11[%c0_55, %c0_56, %c0_57] : memref<2x1x32xf32, #tpu.memory_space<vmem>>, vector<1x1x32xf32>
    %108 = vector.shape_cast %107 : vector<1x1x32xf32> to vector<1x32xf32>
    %c0_58 = arith.constant 0 : index
    %c0_59 = arith.constant 0 : index
    %c0_60 = arith.constant 0 : index
    %109 = vector.load %arg12[%c0_58, %c0_59, %c0_60] : memref<2x1x32xf32, #tpu.memory_space<vmem>>, vector<1x1x32xf32>
    %110 = vector.shape_cast %109 : vector<1x1x32xf32> to vector<1x32xf32>
    %cst_61 = arith.constant dense<0.000000e+00> : vector<16xf32>
    %111 = vector.multi_reduction <add>, %106, %cst_61 [1] : vector<16x32xf32> to vector<16xf32>
    %112 = vector.shape_cast %111 : vector<16xf32> to vector<16x1xf32>
    %cst_62 = arith.constant 3.200000e+01 : f32
    %113 = vector.broadcast %cst_62 : f32 to vector<16x1xf32>
    %114 = arith.divf %112, %113 : vector<16x1xf32>
    %115 = vector.broadcast %114 : vector<16x1xf32> to vector<16x32xf32>
    %116 = arith.subf %106, %115 : vector<16x32xf32>
    %117 = arith.mulf %116, %116 : vector<16x32xf32>
    %cst_63 = arith.constant dense<0.000000e+00> : vector<16xf32>
    %118 = vector.multi_reduction <add>, %117, %cst_63 [1] : vector<16x32xf32> to vector<16xf32>
    %119 = vector.shape_cast %118 : vector<16xf32> to vector<16x1xf32>
    %cst_64 = arith.constant 3.200000e+01 : f32
    %120 = vector.broadcast %cst_64 : f32 to vector<16x1xf32>
    %121 = arith.divf %119, %120 : vector<16x1xf32>
    %122 = vector.broadcast %114 : vector<16x1xf32> to vector<16x32xf32>
    %123 = arith.subf %106, %122 : vector<16x32xf32>
    %cst_65 = arith.constant 9.99999974E-6 : f32
    %124 = vector.broadcast %cst_65 : f32 to vector<16x1xf32>
    %125 = arith.addf %121, %124 : vector<16x1xf32>
    %126 = math.rsqrt %125 : vector<16x1xf32>
    %127 = vector.broadcast %126 : vector<16x1xf32> to vector<16x32xf32>
    %128 = arith.mulf %123, %127 : vector<16x32xf32>
    %129 = vector.broadcast %108 : vector<1x32xf32> to vector<16x32xf32>
    %130 = arith.mulf %128, %129 : vector<16x32xf32>
    %131 = vector.broadcast %110 : vector<1x32xf32> to vector<16x32xf32>
    %132 = arith.addf %130, %131 : vector<16x32xf32>
    %133 = arith.truncf %132 : vector<16x32xf32> to vector<16x32xbf16>
    %c1 = arith.constant 1 : index
    %c0_66 = arith.constant 0 : index
    %c0_67 = arith.constant 0 : index
    %134 = vector.load %arg5[%c1, %c0_66, %c0_67] : memref<2x32x96xbf16, #tpu.memory_space<vmem>>, vector<1x32x96xbf16>
    %135 = vector.shape_cast %134 : vector<1x32x96xbf16> to vector<32x96xbf16>
    %cst_68 = arith.constant dense<0.000000e+00> : vector<16x96xf32>
    %136 = tpu.matmul %133, %135, %cst_68 {dimension_numbers = #tpu.dot_dimension_numbers<[1], [0], [0], [1], [0, 0, 1, 1], [], []>} : vector<16x32xbf16>, vector<32x96xbf16>, vector<16x96xf32> -> vector<16x96xf32>
    %c1_69 = arith.constant 1 : index
    %c0_70 = arith.constant 0 : index
    %c0_71 = arith.constant 0 : index
    %137 = vector.load %arg6[%c1_69, %c0_70, %c0_71] : memref<2x1x96xf32, #tpu.memory_space<vmem>>, vector<1x1x96xf32>
    %138 = vector.shape_cast %137 : vector<1x1x96xf32> to vector<1x96xf32>
    %139 = vector.broadcast %138 : vector<1x96xf32> to vector<16x96xf32>
    %140 = arith.addf %136, %139 : vector<16x96xf32>
    %141 = arith.truncf %140 : vector<16x96xf32> to vector<16x96xbf16>
    %142 = vector.shape_cast %141 : vector<16x96xbf16> to vector<2x8x96xbf16>
    %143 = vector.extract_strided_slice %142 {offsets = [0, 0, 0], sizes = [2, 8, 16], strides = [1, 1, 1]} : vector<2x8x96xbf16> to vector<2x8x16xbf16>
    %144 = vector.extract_strided_slice %142 {offsets = [0, 0, 32], sizes = [2, 8, 16], strides = [1, 1, 1]} : vector<2x8x96xbf16> to vector<2x8x16xbf16>
    %145 = vector.extract_strided_slice %142 {offsets = [0, 0, 64], sizes = [2, 8, 16], strides = [1, 1, 1]} : vector<2x8x96xbf16> to vector<2x8x16xbf16>
    "tpu.trace_start"() <{level = 10 : i32, message = "bqd,bkd->bqk"}> : () -> ()
    %cst_72 = arith.constant dense<0.000000e+00> : vector<2x8x8xf32>
    %146 = tpu.matmul %143, %144, %cst_72 {dimension_numbers = #tpu.dot_dimension_numbers<[2], [2], [1], [1], [0, 0, 0, 1, 1, 1], [0], [0]>} : vector<2x8x16xbf16>, vector<2x8x16xbf16>, vector<2x8x8xf32> -> vector<2x8x8xf32>
    "tpu.trace_stop"() : () -> ()
    %cst_73 = arith.constant dense<0xFF800000> : vector<2x8xf32>
    %147 = vector.multi_reduction <maximumf>, %146, %cst_73 [2] : vector<2x8x8xf32> to vector<2x8xf32>
    %148 = vector.shape_cast %147 : vector<2x8xf32> to vector<2x8x1xf32>
    %149 = vector.broadcast %148 : vector<2x8x1xf32> to vector<2x8x8xf32>
    %150 = arith.subf %146, %149 : vector<2x8x8xf32>
    %151 = math.exp %150 : vector<2x8x8xf32>
    %cst_74 = arith.constant dense<0.000000e+00> : vector<2x8xf32>
    %152 = vector.multi_reduction <add>, %151, %cst_74 [2] : vector<2x8x8xf32> to vector<2x8xf32>
    %153 = vector.shape_cast %152 : vector<2x8xf32> to vector<2x8x1xf32>
    %154 = tpu.reciprocal %153 {approx = true} : vector<2x8x1xf32> -> vector<2x8x1xf32>
    %155 = vector.broadcast %154 : vector<2x8x1xf32> to vector<2x8x8xf32>
    %156 = arith.mulf %151, %155 : vector<2x8x8xf32>
    %157 = arith.truncf %156 : vector<2x8x8xf32> to vector<2x8x8xbf16>
    "tpu.trace_start"() <{level = 10 : i32, message = "bqk,bkd->bqd"}> : () -> ()
    %cst_75 = arith.constant dense<0.000000e+00> : vector<2x8x16xf32>
    %158 = tpu.matmul %157, %145, %cst_75 {dimension_numbers = #tpu.dot_dimension_numbers<[2], [1], [1], [2], [0, 0, 0, 1, 1, 2], [0], [0]>} : vector<2x8x8xbf16>, vector<2x8x16xbf16>, vector<2x8x16xf32> -> vector<2x8x16xf32>
    "tpu.trace_stop"() : () -> ()
    %159 = vector.extract_strided_slice %142 {offsets = [0, 0, 16], sizes = [2, 8, 16], strides = [1, 1, 1]} : vector<2x8x96xbf16> to vector<2x8x16xbf16>
    %160 = vector.extract_strided_slice %142 {offsets = [0, 0, 48], sizes = [2, 8, 16], strides = [1, 1, 1]} : vector<2x8x96xbf16> to vector<2x8x16xbf16>
    %161 = vector.extract_strided_slice %142 {offsets = [0, 0, 80], sizes = [2, 8, 16], strides = [1, 1, 1]} : vector<2x8x96xbf16> to vector<2x8x16xbf16>
    "tpu.trace_start"() <{level = 10 : i32, message = "bqd,bkd->bqk"}> : () -> ()
    %cst_76 = arith.constant dense<0.000000e+00> : vector<2x8x8xf32>
    %162 = tpu.matmul %159, %160, %cst_76 {dimension_numbers = #tpu.dot_dimension_numbers<[2], [2], [1], [1], [0, 0, 0, 1, 1, 1], [0], [0]>} : vector<2x8x16xbf16>, vector<2x8x16xbf16>, vector<2x8x8xf32> -> vector<2x8x8xf32>
    "tpu.trace_stop"() : () -> ()
    %cst_77 = arith.constant dense<0xFF800000> : vector<2x8xf32>
    %163 = vector.multi_reduction <maximumf>, %162, %cst_77 [2] : vector<2x8x8xf32> to vector<2x8xf32>
    %164 = vector.shape_cast %163 : vector<2x8xf32> to vector<2x8x1xf32>
    %165 = vector.broadcast %164 : vector<2x8x1xf32> to vector<2x8x8xf32>
    %166 = arith.subf %162, %165 : vector<2x8x8xf32>
    %167 = math.exp %166 : vector<2x8x8xf32>
    %cst_78 = arith.constant dense<0.000000e+00> : vector<2x8xf32>
    %168 = vector.multi_reduction <add>, %167, %cst_78 [2] : vector<2x8x8xf32> to vector<2x8xf32>
    %169 = vector.shape_cast %168 : vector<2x8xf32> to vector<2x8x1xf32>
    %170 = tpu.reciprocal %169 {approx = true} : vector<2x8x1xf32> -> vector<2x8x1xf32>
    %171 = vector.broadcast %170 : vector<2x8x1xf32> to vector<2x8x8xf32>
    %172 = arith.mulf %167, %171 : vector<2x8x8xf32>
    %173 = arith.truncf %172 : vector<2x8x8xf32> to vector<2x8x8xbf16>
    "tpu.trace_start"() <{level = 10 : i32, message = "bqk,bkd->bqd"}> : () -> ()
    %cst_79 = arith.constant dense<0.000000e+00> : vector<2x8x16xf32>
    %174 = tpu.matmul %173, %161, %cst_79 {dimension_numbers = #tpu.dot_dimension_numbers<[2], [1], [1], [2], [0, 0, 0, 1, 1, 2], [0], [0]>} : vector<2x8x8xbf16>, vector<2x8x16xbf16>, vector<2x8x16xf32> -> vector<2x8x16xf32>
    "tpu.trace_stop"() : () -> ()
    %175 = tpu.concatenate %158, %174 in 2 : vector<2x8x16xf32>, vector<2x8x16xf32> -> vector<2x8x32xf32>
    %176 = vector.shape_cast %175 : vector<2x8x32xf32> to vector<16x32xf32>
    %177 = arith.truncf %176 : vector<16x32xf32> to vector<16x32xbf16>
    %c1_80 = arith.constant 1 : index
    %c0_81 = arith.constant 0 : index
    %c0_82 = arith.constant 0 : index
    %178 = vector.load %arg7[%c1_80, %c0_81, %c0_82] : memref<2x32x32xbf16, #tpu.memory_space<vmem>>, vector<1x32x32xbf16>
    %179 = vector.shape_cast %178 : vector<1x32x32xbf16> to vector<32x32xbf16>
    %cst_83 = arith.constant dense<0.000000e+00> : vector<16x32xf32>
    %180 = tpu.matmul %177, %179, %cst_83 {dimension_numbers = #tpu.dot_dimension_numbers<[1], [0], [0], [1], [0, 0, 1, 1], [], []>} : vector<16x32xbf16>, vector<32x32xbf16>, vector<16x32xf32> -> vector<16x32xf32>
    %c1_84 = arith.constant 1 : index
    %c0_85 = arith.constant 0 : index
    %c0_86 = arith.constant 0 : index
    %181 = vector.load %arg8[%c1_84, %c0_85, %c0_86] : memref<2x1x32xf32, #tpu.memory_space<vmem>>, vector<1x1x32xf32>
    %182 = vector.shape_cast %181 : vector<1x1x32xf32> to vector<1x32xf32>
    %183 = vector.broadcast %182 : vector<1x32xf32> to vector<16x32xf32>
    %184 = arith.addf %180, %183 : vector<16x32xf32>
    %185 = arith.addf %132, %184 : vector<16x32xf32>
    %c1_87 = arith.constant 1 : index
    %c0_88 = arith.constant 0 : index
    %c0_89 = arith.constant 0 : index
    %186 = vector.load %arg9[%c1_87, %c0_88, %c0_89] : memref<2x1x32xf32, #tpu.memory_space<vmem>>, vector<1x1x32xf32>
    %187 = vector.shape_cast %186 : vector<1x1x32xf32> to vector<1x32xf32>
    %c1_90 = arith.constant 1 : index
    %c0_91 = arith.constant 0 : index
    %c0_92 = arith.constant 0 : index
    %188 = vector.load %arg10[%c1_90, %c0_91, %c0_92] : memref<2x1x32xf32, #tpu.memory_space<vmem>>, vector<1x1x32xf32>
    %189 = vector.shape_cast %188 : vector<1x1x32xf32> to vector<1x32xf32>
    %cst_93 = arith.constant dense<0.000000e+00> : vector<16xf32>
    %190 = vector.multi_reduction <add>, %185, %cst_93 [1] : vector<16x32xf32> to vector<16xf32>
    %191 = vector.shape_cast %190 : vector<16xf32> to vector<16x1xf32>
    %cst_94 = arith.constant 3.200000e+01 : f32
    %192 = vector.broadcast %cst_94 : f32 to vector<16x1xf32>
    %193 = arith.divf %191, %192 : vector<16x1xf32>
    %194 = vector.broadcast %193 : vector<16x1xf32> to vector<16x32xf32>
    %195 = arith.subf %185, %194 : vector<16x32xf32>
    %196 = arith.mulf %195, %195 : vector<16x32xf32>
    %cst_95 = arith.constant dense<0.000000e+00> : vector<16xf32>
    %197 = vector.multi_reduction <add>, %196, %cst_95 [1] : vector<16x32xf32> to vector<16xf32>
    %198 = vector.shape_cast %197 : vector<16xf32> to vector<16x1xf32>
    %cst_96 = arith.constant 3.200000e+01 : f32
    %199 = vector.broadcast %cst_96 : f32 to vector<16x1xf32>
    %200 = arith.divf %198, %199 : vector<16x1xf32>
    %201 = vector.broadcast %193 : vector<16x1xf32> to vector<16x32xf32>
    %202 = arith.subf %185, %201 : vector<16x32xf32>
    %cst_97 = arith.constant 9.99999974E-6 : f32
    %203 = vector.broadcast %cst_97 : f32 to vector<16x1xf32>
    %204 = arith.addf %200, %203 : vector<16x1xf32>
    %205 = math.rsqrt %204 : vector<16x1xf32>
    %206 = vector.broadcast %205 : vector<16x1xf32> to vector<16x32xf32>
    %207 = arith.mulf %202, %206 : vector<16x32xf32>
    %208 = vector.broadcast %187 : vector<1x32xf32> to vector<16x32xf32>
    %209 = arith.mulf %207, %208 : vector<16x32xf32>
    %210 = vector.broadcast %189 : vector<1x32xf32> to vector<16x32xf32>
    %211 = arith.addf %209, %210 : vector<16x32xf32>
    %212 = arith.truncf %211 : vector<16x32xf32> to vector<16x32xbf16>
    %c1_98 = arith.constant 1 : index
    %c0_99 = arith.constant 0 : index
    %c0_100 = arith.constant 0 : index
    %213 = vector.load %arg13[%c1_98, %c0_99, %c0_100] : memref<2x32x64xbf16, #tpu.memory_space<vmem>>, vector<1x32x64xbf16>
    %214 = vector.shape_cast %213 : vector<1x32x64xbf16> to vector<32x64xbf16>
    %cst_101 = arith.constant dense<0.000000e+00> : vector<16x64xf32>
    %215 = tpu.matmul %212, %214, %cst_101 {dimension_numbers = #tpu.dot_dimension_numbers<[1], [0], [0], [1], [0, 0, 1, 1], [], []>} : vector<16x32xbf16>, vector<32x64xbf16>, vector<16x64xf32> -> vector<16x64xf32>
    %c1_102 = arith.constant 1 : index
    %c0_103 = arith.constant 0 : index
    %c0_104 = arith.constant 0 : index
    %216 = vector.load %arg14[%c1_102, %c0_103, %c0_104] : memref<2x1x64xf32, #tpu.memory_space<vmem>>, vector<1x1x64xf32>
    %217 = vector.shape_cast %216 : vector<1x1x64xf32> to vector<1x64xf32>
    %218 = vector.broadcast %217 : vector<1x64xf32> to vector<16x64xf32>
    %219 = arith.addf %215, %218 : vector<16x64xf32>
    %cst_105 = arith.constant 0.000000e+00 : f32
    %220 = vector.broadcast %cst_105 : f32 to vector<16x64xf32>
    %221 = arith.maximumf %219, %220 : vector<16x64xf32>
    %222 = arith.truncf %221 : vector<16x64xf32> to vector<16x64xbf16>
    %c1_106 = arith.constant 1 : index
    %c0_107 = arith.constant 0 : index
    %c0_108 = arith.constant 0 : index
    %223 = vector.load %arg15[%c1_106, %c0_107, %c0_108] : memref<2x64x32xbf16, #tpu.memory_space<vmem>>, vector<1x64x32xbf16>
    %224 = vector.shape_cast %223 : vector<1x64x32xbf16> to vector<64x32xbf16>
    %cst_109 = arith.constant dense<0.000000e+00> : vector<16x32xf32>
    %225 = tpu.matmul %222, %224, %cst_109 {dimension_numbers = #tpu.dot_dimension_numbers<[1], [0], [0], [1], [0, 0, 1, 1], [], []>} : vector<16x64xbf16>, vector<64x32xbf16>, vector<16x32xf32> -> vector<16x32xf32>
    %c1_110 = arith.constant 1 : index
    %c0_111 = arith.constant 0 : index
    %c0_112 = arith.constant 0 : index
    %226 = vector.load %arg16[%c1_110, %c0_111, %c0_112] : memref<2x1x32xf32, #tpu.memory_space<vmem>>, vector<1x1x32xf32>
    %227 = vector.shape_cast %226 : vector<1x1x32xf32> to vector<1x32xf32>
    %228 = vector.broadcast %227 : vector<1x32xf32> to vector<16x32xf32>
    %229 = arith.addf %225, %228 : vector<16x32xf32>
    %230 = arith.addf %211, %229 : vector<16x32xf32>
    %c1_113 = arith.constant 1 : index
    %c0_114 = arith.constant 0 : index
    %c0_115 = arith.constant 0 : index
    %231 = vector.load %arg11[%c1_113, %c0_114, %c0_115] : memref<2x1x32xf32, #tpu.memory_space<vmem>>, vector<1x1x32xf32>
    %232 = vector.shape_cast %231 : vector<1x1x32xf32> to vector<1x32xf32>
    %c1_116 = arith.constant 1 : index
    %c0_117 = arith.constant 0 : index
    %c0_118 = arith.constant 0 : index
    %233 = vector.load %arg12[%c1_116, %c0_117, %c0_118] : memref<2x1x32xf32, #tpu.memory_space<vmem>>, vector<1x1x32xf32>
    %234 = vector.shape_cast %233 : vector<1x1x32xf32> to vector<1x32xf32>
    %cst_119 = arith.constant dense<0.000000e+00> : vector<16xf32>
    %235 = vector.multi_reduction <add>, %230, %cst_119 [1] : vector<16x32xf32> to vector<16xf32>
    %236 = vector.shape_cast %235 : vector<16xf32> to vector<16x1xf32>
    %cst_120 = arith.constant 3.200000e+01 : f32
    %237 = vector.broadcast %cst_120 : f32 to vector<16x1xf32>
    %238 = arith.divf %236, %237 : vector<16x1xf32>
    %239 = vector.broadcast %238 : vector<16x1xf32> to vector<16x32xf32>
    %240 = arith.subf %230, %239 : vector<16x32xf32>
    %241 = arith.mulf %240, %240 : vector<16x32xf32>
    %cst_121 = arith.constant dense<0.000000e+00> : vector<16xf32>
    %242 = vector.multi_reduction <add>, %241, %cst_121 [1] : vector<16x32xf32> to vector<16xf32>
    %243 = vector.shape_cast %242 : vector<16xf32> to vector<16x1xf32>
    %cst_122 = arith.constant 3.200000e+01 : f32
    %244 = vector.broadcast %cst_122 : f32 to vector<16x1xf32>
    %245 = arith.divf %243, %244 : vector<16x1xf32>
    %246 = vector.broadcast %238 : vector<16x1xf32> to vector<16x32xf32>
    %247 = arith.subf %230, %246 : vector<16x32xf32>
    %cst_123 = arith.constant 9.99999974E-6 : f32
    %248 = vector.broadcast %cst_123 : f32 to vector<16x1xf32>
    %249 = arith.addf %245, %248 : vector<16x1xf32>
    %250 = math.rsqrt %249 : vector<16x1xf32>
    %251 = vector.broadcast %250 : vector<16x1xf32> to vector<16x32xf32>
    %252 = arith.mulf %247, %251 : vector<16x32xf32>
    %253 = vector.broadcast %232 : vector<1x32xf32> to vector<16x32xf32>
    %254 = arith.mulf %252, %253 : vector<16x32xf32>
    %255 = vector.broadcast %234 : vector<1x32xf32> to vector<16x32xf32>
    %256 = arith.addf %254, %255 : vector<16x32xf32>
    %257 = vector.shape_cast %256 : vector<16x32xf32> to vector<2x8x32xf32>
    %cst_124 = arith.constant dense<0.000000e+00> : vector<2x32xf32>
    %258 = vector.multi_reduction <add>, %257, %cst_124 [1] : vector<2x8x32xf32> to vector<2x32xf32>
    %259 = arith.truncf %258 : vector<2x32xf32> to vector<2x32xbf16>
    %c0_125 = arith.constant 0 : index
    %c0_126 = arith.constant 0 : index
    %260 = vector.load %arg17[%c0_125, %c0_126] : memref<32x16xbf16, #tpu.memory_space<vmem>>, vector<32x16xbf16>
    %cst_127 = arith.constant dense<0.000000e+00> : vector<2x16xf32>
    %261 = tpu.matmul %259, %260, %cst_127 {dimension_numbers = #tpu.dot_dimension_numbers<[1], [0], [0], [1], [0, 0, 1, 1], [], []>} : vector<2x32xbf16>, vector<32x16xbf16>, vector<2x16xf32> -> vector<2x16xf32>
    %c0_128 = arith.constant 0 : index
    %c0_129 = arith.constant 0 : index
    %262 = vector.load %arg18[%c0_128, %c0_129] : memref<1x16xf32, #tpu.memory_space<vmem>>, vector<1x16xf32>
    %263 = vector.broadcast %262 : vector<1x16xf32> to vector<2x16xf32>
    %264 = arith.addf %261, %263 : vector<2x16xf32>
    %cst_130 = arith.constant 0.000000e+00 : f32
    %265 = vector.broadcast %cst_130 : f32 to vector<2x16xf32>
    %266 = arith.maximumf %264, %265 : vector<2x16xf32>
    %267 = arith.truncf %266 : vector<2x16xf32> to vector<2x16xbf16>
    %c0_131 = arith.constant 0 : index
    %c0_132 = arith.constant 0 : index
    %268 = vector.load %arg19[%c0_131, %c0_132] : memref<16x128xbf16, #tpu.memory_space<vmem>>, vector<16x128xbf16>
    %cst_133 = arith.constant dense<0.000000e+00> : vector<2x128xf32>
    %269 = tpu.matmul %267, %268, %cst_133 {dimension_numbers = #tpu.dot_dimension_numbers<[1], [0], [0], [1], [0, 0, 1, 1], [], []>} : vector<2x16xbf16>, vector<16x128xbf16>, vector<2x128xf32> -> vector<2x128xf32>
    %c0_134 = arith.constant 0 : index
    %c0_135 = arith.constant 0 : index
    %270 = vector.load %arg20[%c0_134, %c0_135] : memref<1x128xf32, #tpu.memory_space<vmem>>, vector<1x128xf32>
    %271 = vector.broadcast %270 : vector<1x128xf32> to vector<2x128xf32>
    %272 = arith.addf %269, %271 : vector<2x128xf32>
    %c0_136 = arith.constant 0 : index
    %c0_137 = arith.constant 0 : index
    %c0_138 = arith.constant 0 : index
    %273 = vector.load %arg21[%c0_136, %c0_137, %c0_138] : memref<1x2x128xf32, #tpu.memory_space<vmem>>, vector<1x2x128xf32>
    %274 = vector.shape_cast %273 : vector<1x2x128xf32> to vector<2x128xf32>
    %275 = vector.shape_cast %272 : vector<2x128xf32> to vector<1x2x128xf32>
    tpu.vector_store %arg21[%c0_136, %c0_137, %c0_138], %275 {strides = array<i32>} : memref<1x2x128xf32, #tpu.memory_space<vmem>>, vector<1x2x128xf32>,
    return
  }
  func.func @transform_0(%arg0: i32) -> (i32, i32) {
    %c0_i32 = arith.constant 0 : i32
    %c0_i32_0 = arith.constant 0 : i32
    return %arg0, %c0_i32 : i32, i32
  }
  func.func @transform_1(%arg0: i32) -> (i32, i32) {
    %c0_i32 = arith.constant 0 : i32
    %c0_i32_0 = arith.constant 0 : i32
    %c0_i32_1 = arith.constant 0 : i32
    return %c0_i32, %c0_i32_0 : i32, i32
  }
  func.func @transform_2(%arg0: i32) -> (i32, i32) {
    %c0_i32 = arith.constant 0 : i32
    %c0_i32_0 = arith.constant 0 : i32
    %c0_i32_1 = arith.constant 0 : i32
    return %c0_i32, %c0_i32_0 : i32, i32
  }
  func.func @transform_3(%arg0: i32) -> (i32, i32) {
    %c0_i32 = arith.constant 0 : i32
    %c0_i32_0 = arith.constant 0 : i32
    %c0_i32_1 = arith.constant 0 : i32
    return %c0_i32, %c0_i32_0 : i32, i32
  }
  func.func @transform_4(%arg0: i32) -> (i32, i32, i32) {
    %c0_i32 = arith.constant 0 : i32
    %c0_i32_0 = arith.constant 0 : i32
    %c0_i32_1 = arith.constant 0 : i32
    %c0_i32_2 = arith.constant 0 : i32
    return %c0_i32, %c0_i32_0, %c0_i32_1 : i32, i32, i32
  }
  func.func @transform_5(%arg0: i32) -> (i32, i32, i32) {
    %c0_i32 = arith.constant 0 : i32
    %c0_i32_0 = arith.constant 0 : i32
    %c0_i32_1 = arith.constant 0 : i32
    %c0_i32_2 = arith.constant 0 : i32
    return %c0_i32, %c0_i32_0, %c0_i32_1 : i32, i32, i32
  }
  func.func @transform_6(%arg0: i32) -> (i32, i32, i32) {
    %c0_i32 = arith.constant 0 : i32
    %c0_i32_0 = arith.constant 0 : i32
    %c0_i32_1 = arith.constant 0 : i32
    %c0_i32_2 = arith.constant 0 : i32
    return %c0_i32, %c0_i32_0, %c0_i32_1 : i32, i32, i32
  }
  func.func @transform_7(%arg0: i32) -> (i32, i32, i32) {
    %c0_i32 = arith.constant 0 : i32
    %c0_i32_0 = arith.constant 0 : i32
    %c0_i32_1 = arith.constant 0 : i32
    %c0_i32_2 = arith.constant 0 : i32
    return %c0_i32, %c0_i32_0, %c0_i32_1 : i32, i32, i32
  }
  func.func @transform_8(%arg0: i32) -> (i32, i32, i32) {
    %c0_i32 = arith.constant 0 : i32
    %c0_i32_0 = arith.constant 0 : i32
    %c0_i32_1 = arith.constant 0 : i32
    %c0_i32_2 = arith.constant 0 : i32
    return %c0_i32, %c0_i32_0, %c0_i32_1 : i32, i32, i32
  }
  func.func @transform_9(%arg0: i32) -> (i32, i32, i32) {
    %c0_i32 = arith.constant 0 : i32
    %c0_i32_0 = arith.constant 0 : i32
    %c0_i32_1 = arith.constant 0 : i32
    %c0_i32_2 = arith.constant 0 : i32
    return %c0_i32, %c0_i32_0, %c0_i32_1 : i32, i32, i32
  }
  func.func @transform_10(%arg0: i32) -> (i32, i32, i32) {
    %c0_i32 = arith.constant 0 : i32
    %c0_i32_0 = arith.constant 0 : i32
    %c0_i32_1 = arith.constant 0 : i32
    %c0_i32_2 = arith.constant 0 : i32
    return %c0_i32, %c0_i32_0, %c0_i32_1 : i32, i32, i32
  }
  func.func @transform_11(%arg0: i32) -> (i32, i32, i32) {
    %c0_i32 = arith.constant 0 : i32
    %c0_i32_0 = arith.constant 0 : i32
    %c0_i32_1 = arith.constant 0 : i32
    %c0_i32_2 = arith.constant 0 : i32
    return %c0_i32, %c0_i32_0, %c0_i32_1 : i32, i32, i32
  }
  func.func @transform_12(%arg0: i32) -> (i32, i32, i32) {
    %c0_i32 = arith.constant 0 : i32
    %c0_i32_0 = arith.constant 0 : i32
    %c0_i32_1 = arith.constant 0 : i32
    %c0_i32_2 = arith.constant 0 : i32
    return %c0_i32, %c0_i32_0, %c0_i32_1 : i32, i32, i32
  }
  func.func @transform_13(%arg0: i32) -> (i32, i32, i32) {
    %c0_i32 = arith.constant 0 : i32
    %c0_i32_0 = arith.constant 0 : i32
    %c0_i32_1 = arith.constant 0 : i32
    %c0_i32_2 = arith.constant 0 : i32
    return %c0_i32, %c0_i32_0, %c0_i32_1 : i32, i32, i32
  }
  func.func @transform_14(%arg0: i32) -> (i32, i32, i32) {
    %c0_i32 = arith.constant 0 : i32
    %c0_i32_0 = arith.constant 0 : i32
    %c0_i32_1 = arith.constant 0 : i32
    %c0_i32_2 = arith.constant 0 : i32
    return %c0_i32, %c0_i32_0, %c0_i32_1 : i32, i32, i32
  }
  func.func @transform_15(%arg0: i32) -> (i32, i32, i32) {
    %c0_i32 = arith.constant 0 : i32
    %c0_i32_0 = arith.constant 0 : i32
    %c0_i32_1 = arith.constant 0 : i32
    %c0_i32_2 = arith.constant 0 : i32
    return %c0_i32, %c0_i32_0, %c0_i32_1 : i32, i32, i32
  }
  func.func @transform_16(%arg0: i32) -> (i32, i32) {
    %c0_i32 = arith.constant 0 : i32
    %c0_i32_0 = arith.constant 0 : i32
    %c0_i32_1 = arith.constant 0 : i32
    return %c0_i32, %c0_i32_0 : i32, i32
  }
  func.func @transform_17(%arg0: i32) -> (i32, i32) {
    %c0_i32 = arith.constant 0 : i32
    %c0_i32_0 = arith.constant 0 : i32
    %c0_i32_1 = arith.constant 0 : i32
    return %c0_i32, %c0_i32_0 : i32, i32
  }
  func.func @transform_18(%arg0: i32) -> (i32, i32) {
    %c0_i32 = arith.constant 0 : i32
    %c0_i32_0 = arith.constant 0 : i32
    %c0_i32_1 = arith.constant 0 : i32
    return %c0_i32, %c0_i32_0 : i32, i32
  }
  func.func @transform_19(%arg0: i32) -> (i32, i32) {
    %c0_i32 = arith.constant 0 : i32
    %c0_i32_0 = arith.constant 0 : i32
    %c0_i32_1 = arith.constant 0 : i32
    return %c0_i32, %c0_i32_0 : i32, i32
  }
  func.func @transform_20(%arg0: i32) -> (i32, i32, i32) {
    %c0_i32 = arith.constant 0 : i32
    %c0_i32_0 = arith.constant 0 : i32
    %c0_i32_1 = arith.constant 0 : i32
    return %arg0, %c0_i32, %c0_i32_0 : i32, i32, i32
  }
}

</mosaic_0001>

<bundles_post_ra>
// kernel: tpu_custom_call.1
= control target key start
LH: loop header
LB: loop body
LE: loop exit
PB: predicated region body
PF: predicated region fallthrough
CT: control target
= control target key end

     0   :  { %s2452_s0 = inlined_call_operand.vmem [shape: f32[16,2], index: 0, kind: input, shape index: {}]   ;;  %s2453_s1 = inlined_call_operand.vmem [shape: f32[16,32], index: 1, kind: input, shape index: {}]   ;;  %s2454_s2 = inlined_call_operand.hbm [shape: bf16[2,32], index: 2, kind: input, shape index: {}]   ;;  %s2455_s3 = inlined_call_operand.hbm [shape: f32[1,32], index: 3, kind: input, shape index: {}]   ;;  %s2456_s4 = inlined_call_operand.vmem [shape: bf16[2,32,96], index: 4, kind: input, shape index: {}]   ;;  %s2457_s5 = inlined_call_operand.hbm [shape: f32[2,1,96], index: 5, kind: input, shape index: {}]   ;;  %s2458_s6 = inlined_call_operand.vmem [shape: bf16[2,32,32], index: 6, kind: input, shape index: {}]   ;;  %s2459_s7 = inlined_call_operand.hbm [shape: f32[2,1,32], index: 7, kind: input, shape index: {}]   ;;  %s2460_s8 = inlined_call_operand.hbm [shape: f32[2,1,32], index: 8, kind: input, shape index: {}]   ;;  %s2461_s9 = inlined_call_operand.hbm [shape: f32[2,1,32], index: 9, kind: input, shape index: {}]   ;;  %s2462_s10 = inlined_call_operand.hbm [shape: f32[2,1,32], index: 10, kind: input, shape index: {}]   ;;  %s2463_s11 = inlined_call_operand.hbm [shape: f32[2,1,32], index: 11, kind: input, shape index: {}]   ;;  %s2464_s12 = inlined_call_operand.vmem [shape: bf16[2,32,64], index: 12, kind: input, shape index: {}]   ;;  %s2465_s13 = inlined_call_operand.hbm [shape: f32[2,1,64], index: 13, kind: input, shape index: {}]   ;;  %s2466_s14 = inlined_call_operand.vmem [shape: bf16[2,64,32], index: 14, kind: input, shape index: {}]   ;;  %s2467_s15 = inlined_call_operand.hbm [shape: f32[2,1,32], index: 15, kind: input, shape index: {}]   ;;  %s2468_s16 = inlined_call_operand.vmem [shape: bf16[32,16], index: 16, kind: input, shape index: {}]   ;;  %s2469_s17 = inlined_call_operand.vmem [shape: f32[1,16], index: 17, kind: input, shape index: {}]   ;;  %s2470_s18 = inlined_call_operand.hbm [shape: bf16[16,128], index: 18, kind: input, shape index: {}]   ;;  %s2471_s19 = inlined_call_operand.vmem [shape: f32[1,128], index: 19, kind: input, shape index: {}]   ;;  %s2472_s20 = inlined_call_operand.hbm [shape: f32[1,2,128], index: 20, kind: output, shape index: {}]  }
   0x1   :  { %2476 = sst [smem:[#allocation28_spill]] %s2452_s0 }
   0x2   :  { %2477 = sst [smem:[#allocation29_spill]] %s2453_s1 }
   0x3   :  { %2478 = sst [smem:[#allocation30_spill]] %s2454_s2 }
   0x4   :  { %2479 = sst [smem:[#allocation31_spill]] %s2455_s3 }
   0x5   :  { %2480 = sst [smem:[#allocation32_spill]] %s2456_s4 }
   0x6   :  { %25 = vsyncpa [#allocation3], 0 }
   0x7   :  { %26 = vsyncpa [#allocation6], 0 }
   0x8   :  { %27 = vsyncpa [#allocation9], 0 }
   0x9   :  { %28 = vsyncpa [#allocation12], 0 }
   0xa   :  { %29 = vsyncpa [#allocation15], 0 }
   0xb   :  { %30 = vsyncpa [#allocation18], 0  ;;  %s2481_s23 = sld [smem:[#allocation31_spill]] }
  0x11   :  { %s52_s24 = sshll.u32 %s2481_s23, 4  ;;  %s53_s24 = int_to_ptr.hbm [resolvable:$true] %s52_s24 }
  0x12   :  { %31 = vsyncpa [#allocation4], 0  ;;  %s2016_s2 = smov [#allocation5]   ;;  %s79_s27 = sshll.u32 %s2459_s7, 4  ;;  %s80_s27 = int_to_ptr.hbm [resolvable:$true] %s79_s27 }
  0x13   :  { %s54_s25 = sshll.u32 %s2016_s2, 4  ;;  %s2017_s28 = smov [#allocation8]   ;;  %s55_s25 = int_to_ptr.vmem [resolvable:$true] %s54_s25 }
  0x14   :  { %57 = dma.hbm_to_vmem [thread:$0]  %s53_s24, 16, %s55_s25, [#allocation6]  }
  0x15   :  { %s81_s4 = sshll.u32 %s2017_s28, 4  ;;  %s105_s0 = sshll.u32 %s2461_s9, 4  ;;  %s82_s4 = int_to_ptr.vmem [resolvable:$true] %s81_s4  ;;  %s106_s0 = int_to_ptr.hbm [resolvable:$true] %s105_s0 }
  0x16   :  { %s2018_s21 = smov 16   ;;  %s2019_s1 = smov 1  }
  0x17   :  { %87 = dma.hbm_to_vmem [thread:$0]  %s80_s27, 32, %s82_s4, [#allocation9], %s2018_s21, %s2018_s21, %s2019_s1  }
  0x18   :  { %s131_s24 = sshll.u32 %s2463_s11, 4  ;;  %s2020_s7 = smov [#allocation11]   ;;  %s132_s24 = int_to_ptr.hbm [resolvable:$true] %s131_s24 }
  0x19   :  { %s107_s2 = sshll.u32 %s2020_s7, 4  ;;  %s2021_s9 = smov [#allocation14]   ;;  %s108_s2 = int_to_ptr.vmem [resolvable:$true] %s107_s2 }
  0x1a   :  { %113 = dma.hbm_to_vmem [thread:$0]  %s106_s0, 32, %s108_s2, [#allocation12], %s2018_s21, %s2018_s21, %s2019_s1  }
  0x1b   :  { %s133_s25 = sshll.u32 %s2021_s9, 4  ;;  %s161_s28 = sshll.u32 %s2467_s15, 4  ;;  %s134_s25 = int_to_ptr.vmem [resolvable:$true] %s133_s25  ;;  %s162_s28 = int_to_ptr.hbm [resolvable:$true] %s161_s28 }
  0x1c   :  { %139 = dma.hbm_to_vmem [thread:$0]  %s132_s24, 32, %s134_s25, [#allocation15], %s2018_s21, %s2018_s21, %s2019_s1  }
  0x1d   :  { %s2482_s4 = sld [smem:[#allocation30_spill]]  ;;  %s2022_s30 = smov [#allocation17]  }
  0x1e   :  { %s163_s22 = sshll.u32 %s2022_s30, 4  ;;  %s2023_s0 = smov [#allocation2]   ;;  %s164_s22 = int_to_ptr.vmem [resolvable:$true] %s163_s22 }
  0x1f   :  { %169 = dma.hbm_to_vmem [thread:$0]  %s162_s28, 32, %s164_s22, [#allocation18], %s2018_s21, %s2018_s21, %s2019_s1  }
  0x20   :  { %s43_s15 = sshll.u32 %s2023_s0, 4  ;;  %s64_s2 = sshll.u32 %s2457_s5, 4  ;;  %s44_s15 = int_to_ptr.vmem [resolvable:$true] %s43_s15  ;;  %s65_s2 = int_to_ptr.hbm [resolvable:$true] %s64_s2 }
  0x21   :  { %s92_s25 = sshll.u32 %s2460_s8, 4  ;;  %s2024_s3 = smov [#allocation7]   ;;  %s93_s25 = int_to_ptr.hbm [resolvable:$true] %s92_s25 }
  0x22   :  { %s66_s26 = sshll.u32 %s2024_s3, 4  ;;  %s2025_s28 = smov [#allocation10]   ;;  %s67_s26 = int_to_ptr.vmem [resolvable:$true] %s66_s26 }
  0x23   :  { %s41_s29 = sshll.u32 %s2482_s4, 4  ;;  %s94_s11 = sshll.u32 %s2025_s28, 4  ;;  %s42_s29 = int_to_ptr.hbm [resolvable:$true] %s41_s29  ;;  %s95_s11 = int_to_ptr.vmem [resolvable:$true] %s94_s11 }
  0x24   :  { %46 = dma.hbm_to_vmem [thread:$0]  %s42_s29, 16, %s44_s15, [#allocation3]  }
  0x25   :  { %72 = dma.hbm_to_vmem [thread:$0]  %s65_s2, 32, %s67_s26, [#allocation6], %s2018_s21, %s2018_s21, %s2019_s1  }
  0x26   :  { %s118_s5 = sshll.u32 %s2462_s10, 4  ;;  %s146_s30 = sshll.u32 %s2465_s13, 4  ;;  %s119_s5 = int_to_ptr.hbm [resolvable:$true] %s118_s5  ;;  %s147_s30 = int_to_ptr.hbm [resolvable:$true] %s146_s30 }
  0x27   :  { %100 = dma.hbm_to_vmem [thread:$0]  %s93_s25, 32, %s95_s11, [#allocation9], %s2018_s21, %s2018_s21, %s2019_s1  }
  0x28   :  { %s2026_s22 = smov [#allocation13]   ;;  %s2027_s15 = smov [#allocation16]  }
  0x29   :  { %s120_s0 = sshll.u32 %s2026_s22, 4  ;;  %s148_s10 = sshll.u32 %s2027_s15, 4  ;;  %s121_s0 = int_to_ptr.vmem [resolvable:$true] %s120_s0  ;;  %s149_s10 = int_to_ptr.vmem [resolvable:$true] %s148_s10 }
  0x2a   :  { %126 = dma.hbm_to_vmem [thread:$0]  %s119_s5, 32, %s121_s0, [#allocation12], %s2018_s21, %s2018_s21, %s2019_s1  }
  0x2b   :  { %s178_s2 = sshll.u32 %s2470_s18, 4  ;;  %s2028_s13 = smov [#allocation19]   ;;  %s179_s2 = int_to_ptr.hbm [resolvable:$true] %s178_s2 }
  0x2c   :  { %154 = dma.hbm_to_vmem [thread:$0]  %s147_s30, 32, %s149_s10, [#allocation15], %s2018_s21, %s2018_s21, %s2019_s1  }
  0x2d   :  { %s180_s24 = sshll.u32 %s2028_s13, 4  ;;  %s2029_s9 = smov 64   ;;  %s181_s24 = int_to_ptr.vmem [resolvable:$true] %s180_s24 }
  0x2e   :  { %s2030_s25 = smov 4  }
  0x2f   :  { %186 = dma.hbm_to_vmem [thread:$0]  %s179_s2, 128, %s181_s24, [#allocation18], %s2029_s9, %s2029_s9, %s2030_s25  }
  0x30   :  { %2002 = dma.done.wait [#allocation3], 16  }
  0x31   :  { %2003 = vsyncadd [#allocation3], 4294967280 }
  0x32   :  { %2004 = dma.done.wait [#allocation6], 48  }
  0x33   :  { %2005 = vsyncadd [#allocation6], 4294967248 }
  0x34   :  { %2006 = dma.done.wait [#allocation9], 64  }
  0x35   :  { %2007 = vsyncadd [#allocation9], 4294967232 }
  0x36   :  { %2008 = dma.done.wait [#allocation12], 64  }
  0x37   :  { %2009 = vsyncadd [#allocation12], 4294967232 }
  0x38   :  { %2010 = dma.done.wait [#allocation15], 64  }
  0x39   :  { %2011 = vsyncadd [#allocation15], 4294967232 }
  0x3a   :  { %2012 = dma.done.wait [#allocation18], 160  }
  0x3b   :  { %2013 = vsyncadd [#allocation18], 4294967136  ;;  %vm246_vm0 = vcmask 1040384   ;;  %v237_v0 = vld [vmem:[#allocation2] sm:$0x1]  ;;  %s2483_s3 = sld [smem:[#allocation28_spill]] }
  0x3c   :  { %v248_v3 = vsel %vm246_vm0, %v237_v0, 0  ;;  %vm242_vm1 = vcmask 15360   ;;  %s2484_s4 = sld [smem:[#allocation32_spill]]  ;;  %v1645_v8 = vld [vmem:[#allocation5] ss:$0 sm:$0xff]  ;;  %vm289_vm2 = vcmask 261120  }
  0x3d   :  { %257 = vmatpush.bf16.msra.mxu0 %v248_v3  ;;  %s2485_s22 = sld [smem:[#allocation29_spill]]  ;;  %v1646_v17 = vld [vmem:[#allocation7] ss:$0 sm:$0xff]  ;;  %s2031_s10 = smov 112   ;;  %vm314_vm3 = vcmask 130048   ;;  %vm358_vm4 = vcmask 64512  }
  0x3e   :  { %s2032_s23 = smov 80   ;;  %s2033_s7 = smov 96   ;;  %vm388_vm5 = vcmask 1043456   ;;  %vm728_vm13 = vcmask 523264  }
  0x3f   :  { %s2034_s2 = smov 48   ;;  %s2036_s15 = smov [#allocation20]  }
  0x40   :  { %s1435_s13 = sshll.u32 %s2036_s15, 4  ;;  %s1436_s13 = int_to_ptr.vmem [resolvable:$true] %s1435_s13 }
  0x41   :  { %v234_v1 = vld [vmem:[%s2483_s3] sm:$0xff]  ;;  %v235_v2 = vld [vmem:[%s2483_s3 + $0x8] sm:$0xff] }
  0x42   :  { %v236_v4 = vpack.c.bf16 %v235_v2, %v234_v1  ;;  %v1592_v5 = vld [vmem:[%s2484_s4 + $0x8] sm:$0xff]  ;;  %v1591_v6 = vld [vmem:[%s2484_s4] sm:$0xff] }
  0x43   :  { %299 = vmatpush.bf16.msra.mxu1 %v1592_v5  ;;  %v264_v10 = vld [vmem:[%s2485_s22] sm:$0xff]  ;;  %v265_v12 = vld [vmem:[%s2485_s22 + $0x8] sm:$0xff] }
  0x44   :  { %1452 = vmatmul.msk.bf16.vlgmr.msra.gmra.mxu0 %vm242_vm1, %v236_v4 }
  0x47   :  { %300 = vmatpush.bf16.msra.mxu1 %v1591_v6 }
  0xc1   :  { %v259_v7 = vpop.f32.mrf.mxu0 }
  0xc2   :  { %v260_v9 = vadd.f32 %v1645_v8, %v259_v7 }
  0xc4   :  { %v2219_v14 = vadd.f32 %v264_v10, %v260_v9 }
  0xc9   :  { %v261_v11 = vpop.f32.mrf.mxu0 }
  0xca   :  { %v262_v13 = vadd.f32 %v1645_v8, %v261_v11 }
  0xcc   :  { %v2221_v15 = vadd.f32 %v265_v12, %v262_v13 }
  0xce   :  { %v268_v16 = vpack.c.bf16 %v2221_v15, %v2219_v14 }
  0xd0   :  { %1461 = vmatmul.msk.bf16.vlgmr.msra.gmra.mxu1 %vm289_vm2, %v268_v16 }
 0x14d   :  { %v302_v18 = vpop.f32.mrf.mxu1 }
 0x14e   :  { %v303_v19 = vadd.f32 %v1646_v17, %v302_v18 }
 0x150   :  { %v307_v20 = vpack.c.bf16 %v303_v19, %v303_v19 }
 0x152   :  { %v310_v21 = vunpack.c.l.b16 %v307_v20 }
 0x154   :  { %v2226_v22 = vpack.c.b16 %v310_v21, %v310_v21 }
 0x155   :  { %v304_v23 = vpop.f32.mrf.mxu1 }
 0x156   :  { %v305_v24 = vadd.f32 %v1646_v17, %v304_v23  ;;  %426 = vrot.lane.b32.xlu2 %v2226_v22, %s2031_s10  ;;  %428 = vrot.lane.b32.xlu1 %v2226_v22, %s2032_s23 }
 0x157   :  { %312 = vrot.lane.b32.xlu0 %v2226_v22, %s2033_s7 }
 0x158   :  { %v308_v25 = vpack.c.bf16 %v305_v24, %v305_v24 }
 0x15a   :  { %v335_v26 = vunpack.c.l.b16 %v308_v25 }
 0x15c   :  { %v2234_v27 = vpack.c.b16 %v335_v26, %v335_v26 }
 0x15e   :  { %449 = vrot.lane.b32.xlu2 %v2234_v27, %s2031_s10  ;;  %451 = vrot.lane.b32.xlu1 %v2234_v27, %s2032_s23 }
 0x15f   :  { %337 = vrot.lane.b32.xlu0 %v2234_v27, %s2033_s7 }
 0x1b0   :  { %v427_v36 = vpop.permute.xlu2 %426 }
 0x1b8   :  { %v450_v37 = vpop.permute.xlu2 %449 }
 0x1c8   :  { %v429_v28 = vpop.permute.xlu1 %428 }
 0x1c9   :  { %v313_v29 = vpop.permute.xlu0 %312  ;;  %v434_v30 = vsel %vm314_vm3, %v429_v28, 0 }
 0x1ca   :  { %v319_v31 = vsel %vm314_vm3, %v313_v29, 0 }
 0x1cb   :  { %328 = vmatpush.bf16.xpose.msra.mxu2 %v319_v31 }
 0x1d0   :  { %v452_v32 = vpop.permute.xlu1 %451 }
 0x1d1   :  { %v338_v33 = vpop.permute.xlu0 %337  ;;  %v457_v34 = vsel %vm314_vm3, %v452_v32, 0 }
 0x1d2   :  { %1462 = vmatmul.msk.bf16.vlgmr.msra.gmra.mxu2 %vm314_vm3, %v307_v20  ;;  %v343_v35 = vsel %vm314_vm3, %v338_v33, 0 }
 0x1d3   :  { %443 = vmatpush.bf16.xpose.msrb.mxu2 %v434_v30  ;;  %352 = vmatpush.bf16.xpose.msra.mxu3 %v343_v35 }
 0x1da   :  { %1463 = vmatmul.msk.bf16.vlgmr.msra.gmra.mxu3 %vm314_vm3, %v308_v25 }
 0x1db   :  { %466 = vmatpush.bf16.xpose.msrb.mxu3 %v457_v34 }
 0x1e2   :  { %1466 = vmatmul.msk.bf16.vlgmr.msrb.gmra.mxu2 %vm314_vm3, %v427_v36  ;;  %v1594_v36 = vld [vmem:[%s2458_s6 + $0x8] sm:$0xff] }
 0x1e3   :  { %578 = vmatpush.bf16.msra.mxu2 %v1594_v36 }
 0x1ea   :  { %1467 = vmatmul.msk.bf16.vlgmr.msrb.gmra.mxu3 %vm314_vm3, %v450_v37 }
 0x255   :  { %v330_v38 = vpop.f32.mrf.mxu2 }
 0x256   :  { %v359_v39 = vsel %vm358_vm4, %v330_v38, -inf }
 0x257   :  { %360 = vmax.xlane.f32.xlu0 %v359_v39 }
 0x25d   :  { %v332_v40 = vpop.f32.mrf.mxu2  ;;  %v354_v41 = vpop.f32.mrf.mxu3 }
 0x25e   :  { %v362_v42 = vsel %vm358_vm4, %v354_v41, -inf }
 0x25f   :  { %363 = vmax.xlane.f32.xlu1 %v362_v42  ;;  %v1593_v42 = vld [vmem:[%s2458_s6] sm:$0xff] }
 0x260   :  { %579 = vmatpush.bf16.msra.mxu2 %v1593_v42  ;;  %v1600_v42 = vld [vmem:[%s2466_s14 + $0x18] sm:$0xff] }
 0x265   :  { %v356_v43 = vpop.f32.mrf.mxu3  ;;  %v445_v44 = vpop.f32.mrf.mxu2 }
 0x266   :  { %v472_v45 = vsel %vm358_vm4, %v445_v44, -inf }
 0x267   :  { %473 = vmax.xlane.f32.xlu2 %v472_v45 }
 0x26b   :  { %405 = vrot.lane.b32.xlu0 %v2234_v27, %s2029_s9 }
 0x26d   :  { %v447_v46 = vpop.f32.mrf.mxu2  ;;  %v468_v47 = vpop.f32.mrf.mxu3 }
 0x26e   :  { %v475_v48 = vsel %vm358_vm4, %v468_v47, -inf }
 0x26f   :  { %476 = vmax.xlane.f32.xlu2 %v475_v48 }
 0x275   :  { %v470_v49 = vpop.f32.mrf.mxu3 }
 0x276   :  { %v1647_v49 = vld [vmem:[#allocation8] ss:$0 sm:$0xff] }
 0x287   :  { %383 = vrot.lane.b32.xlu2 %v2226_v22, %s2029_s9 }
 0x2ca   :  { %v361_v50 = vpop.xlane.xlu0 %360 }
 0x2cb   :  { %v365_v51 = vsub.f32 %v330_v38, %v361_v50 }
 0x2cd   :  { %v367_v52 = vmul.f32 1.442695, %v365_v51 }
 0x2cf   :  { %1664 = vpow2.f32 %v367_v52 }
 0x2d2   :  { %v364_v53 = vpop.xlane.xlu1 %363 }
 0x2d3   :  { %v366_v54 = vsub.f32 %v354_v41, %v364_v53 }
 0x2d5   :  { %v1665_v55 = vpop.eup %1664  ;;  %v369_v56 = vmul.f32 1.442695, %v366_v54 }
 0x2d6   :  { %v371_v57 = vsel %vm358_vm4, %v1665_v55, 0.0 }
 0x2d7   :  { %1666 = vpow2.f32 %v369_v56  ;;  %372 = vadd.xlane.f32.xlu0 %v371_v57 }
 0x2da   :  { %v474_v58 = vpop.xlane.xlu2 %473 }
 0x2db   :  { %v478_v59 = vsub.f32 %v445_v44, %v474_v58  ;;  %v2035_v58 = vmov 32.0  }
 0x2dd   :  { %v1667_v60 = vpop.eup %1666  ;;  %v480_v61 = vmul.f32 1.442695, %v478_v59  ;;  %v406_v62 = vpop.permute.xlu0 %405 }
 0x2de   :  { %v374_v63 = vsel %vm358_vm4, %v1667_v60, 0.0  ;;  %v411_v0 = vsel %vm388_vm5, %v406_v62, 0 }
 0x2df   :  { %1668 = vpow2.f32 %v480_v61  ;;  %375 = vadd.xlane.f32.xlu1 %v374_v63  ;;  %420 = vmatpush.bf16.msrb.mxu1 %v411_v0 }
 0x2e2   :  { %v477_v1 = vpop.xlane.xlu2 %476 }
 0x2e3   :  { %v479_v2 = vsub.f32 %v468_v47, %v477_v1 }
 0x2e5   :  { %v1669_v3 = vpop.eup %1668  ;;  %v482_v4 = vmul.f32 1.442695, %v479_v2 }
 0x2e6   :  { %v484_v5 = vsel %vm358_vm4, %v1669_v3, 0.0 }
 0x2e7   :  { %1670 = vpow2.f32 %v482_v4  ;;  %485 = vadd.xlane.f32.xlu1 %v484_v5 }
 0x2ea   :  { %v384_v6 = vpop.permute.xlu2 %383 }
 0x2eb   :  { %517 = vrot.lane.b32.xlu0 %v2234_v27, %s2034_s2  ;;  %v390_v7 = vsel %vm388_vm5, %v384_v6, 0 }
 0x2ec   :  { %399 = vmatpush.bf16.msrb.mxu0 %v390_v7 }
 0x2ed   :  { %v1671_v8 = vpop.eup %1670 }
 0x2ee   :  { %v487_v9 = vsel %vm358_vm4, %v1671_v8, 0.0 }
 0x2ef   :  { %488 = vadd.xlane.f32.xlu1 %v487_v9  ;;  %v1596_v9 = vld [vmem:[%s2464_s12 + $0x8] sm:$0xff] }
 0x2f0   :  { %681 = vmatpush.bf16.msra.mxu3 %v1596_v9 }
 0x308   :  { %496 = vrot.lane.b32.xlu1 %v2226_v22, %s2034_s2 }
 0x34a   :  { %v373_v10 = vpop.xlane.xlu0 %372 }
 0x34b   :  { %1672 = vrcp.f32 %v373_v10 }
 0x351   :  { %v1673_v11 = vpop.eup %1672 }
 0x352   :  { %v379_v12 = vmul.f32 %v1673_v11, %v1665_v55  ;;  %v376_v13 = vpop.xlane.xlu1 %375 }
 0x353   :  { %1674 = vrcp.f32 %v376_v13 }
 0x354   :  { %v381_v16 = vpack.c.bf16 %v379_v12, %v379_v12  ;;  %v1595_v12 = vld [vmem:[%s2464_s12] sm:$0xff] }
 0x355   :  { %682 = vmatpush.bf16.msra.mxu3 %v1595_v12 }
 0x356   :  { %1464 = vmatmul.msk.bf16.vlgmr.msrb.gmra.mxu0 %vm358_vm4, %v381_v16 }
 0x359   :  { %v1675_v17 = vpop.eup %1674 }
 0x35a   :  { %v380_v18 = vmul.f32 %v1675_v17, %v1667_v60  ;;  %v486_v19 = vpop.xlane.xlu1 %485 }
 0x35c   :  { %v382_v20 = vpack.c.bf16 %v380_v18, %v380_v18 }
 0x35d   :  { %v518_v21 = vpop.permute.xlu0 %517 }
 0x35e   :  { %v523_v23 = vsel %vm388_vm5, %v518_v21, 0  ;;  %1465 = vmatmul.msk.bf16.vlgmr.msrb.gmra.mxu1 %vm358_vm4, %v382_v20 }
 0x35f   :  { %532 = vmatpush.bf16.msra.mxu1 %v523_v23 }
 0x362   :  { %v489_v22 = vpop.xlane.xlu1 %488 }
 0x363   :  { %1676 = vrcp.f32 %v489_v22 }
 0x364   :  { %1678 = vrcp.f32 %v486_v19 }
 0x365   :  { %1680 = vrcp.f32 %v2035_v58 }
 0x369   :  { %v1677_v24 = vpop.eup %1676 }
 0x36a   :  { %v493_v25 = vmul.f32 %v1677_v24, %v1671_v8  ;;  %v1679_v27 = vpop.eup %1678 }
 0x36b   :  { %v492_v28 = vmul.f32 %v1679_v27, %v1669_v3  ;;  %v1681_v59 = vpop.eup %1680 }
 0x36c   :  { %v495_v26 = vpack.c.bf16 %v493_v25, %v493_v25  ;;  %v597_v60 = vmul.f32 32.0, %v1681_v59  ;;  %vm601_vm6 = vweird.f32 %v1681_v59 }
 0x36d   :  { %v494_v31 = vpack.c.bf16 %v492_v28, %v492_v28 }
 0x36e   :  { %1469 = vmatmul.msk.bf16.vlgmr.msra.gmra.mxu1 %vm358_vm4, %v495_v26  ;;  %v598_v61 = vsub.f32 1.0, %v597_v60 }
 0x370   :  { %v599_v62 = vmul.f32 %v1681_v59, %v598_v61 }
 0x372   :  { %v600_v63 = vadd.f32 %v1681_v59, %v599_v62 }
 0x374   :  { %v2288_v0 = vsel %vm601_vm6, %v1681_v59, %v600_v63 }
 0x37a   :  { %v497_v29 = vpop.permute.xlu1 %496 }
 0x37b   :  { %v502_v30 = vsel %vm388_vm5, %v497_v29, 0 }
 0x37c   :  { %511 = vmatpush.bf16.msra.mxu0 %v502_v30 }
 0x37f   :  { %1468 = vmatmul.msk.bf16.vlgmr.msra.gmra.mxu0 %vm358_vm4, %v494_v31  ;;  %v1648_v31 = vld [vmem:[#allocation10] ss:$0 sm:$0xff] }
 0x380   :  { %736 = vmatpush.bf16.msrb.mxu0 %v1600_v42 }
 0x3d3   :  { %v401_v32 = vpop.f32.mrf.mxu0 }
 0x3db   :  { %v403_v33 = vpop.f32.mrf.mxu0  ;;  %v422_v34 = vpop.f32.mrf.mxu1 }
 0x3e3   :  { %v424_v35 = vpop.f32.mrf.mxu1 }
 0x3e4   :  { %v1649_v35 = vld [vmem:[#allocation11] ss:$0 sm:$0xff] }
 0x3eb   :  { %v534_v37 = vpop.f32.mrf.mxu1 }
 0x3f3   :  { %v536_v38 = vpop.f32.mrf.mxu1 }
 0x3fc   :  { %v513_v39 = vpop.f32.mrf.mxu0 }
 0x3fd   :  { %v1635_v40 = vpack.i.bf16 %v534_v37, %v513_v39 }
 0x3ff   :  { %1636 = vrot.lane.b32.xlu2 %v1635_v40, %s2018_s21 }
 0x404   :  { %v515_v41 = vpop.f32.mrf.mxu0 }
 0x459   :  { %v1637_v43 = vpop.permute.xlu2 %1636 }
 0x45a   :  { %v1639_v44 = vunpack.i.h.bf16 %v1637_v43  ;;  %v1638_v45 = vunpack.i.l.bf16 %v1637_v43  ;;  %v1599_v43 = vld [vmem:[%s2466_s14 + $0x10] sm:$0xff] }
 0x45b   :  { %737 = vmatpush.bf16.msrb.mxu0 %v1599_v43 }
 0x45c   :  { %v547_v46 = vsel %vm314_vm3, %v422_v34, %v1639_v44  ;;  %v546_v47 = vsel %vm314_vm3, %v401_v32, %v1638_v45  ;;  %v1598_v44 = vld [vmem:[%s2466_s14 + $0x8] sm:$0xff]  ;;  %v1597_v45 = vld [vmem:[%s2466_s14] sm:$0xff] }
 0x45d   :  { %v548_v48 = vpack.c.bf16 %v547_v46, %v546_v47  ;;  %v1650_v47 = vld [vmem:[#allocation16] ss:$0 sm:$0xff] }
 0x45f   :  { %1478 = vmatmul.msk.bf16.vlgmr.msra.gmra.mxu2 %vm289_vm2, %v548_v48  ;;  %738 = vmatpush.bf16.msrb.mxu0 %v1598_v44 }
 0x463   :  { %739 = vmatpush.bf16.msrb.mxu0 %v1597_v45 }
 0x4e2   :  { %v581_v50 = vpop.f32.mrf.mxu2 }
 0x4e3   :  { %v582_v51 = vadd.f32 %v1647_v49, %v581_v50 }
 0x4e5   :  { %v586_v52 = vadd.f32 %v582_v51, %v2219_v14 }
 0x4e7   :  { %v590_v53 = vsel %vm289_vm2, %v586_v52, 0.0 }
 0x4e8   :  { %591 = vadd.xlane.f32.xlu0 %v590_v53 }
 0x4ea   :  { %v583_v54 = vpop.f32.mrf.mxu2 }
 0x4eb   :  { %v584_v55 = vadd.f32 %v1647_v49, %v583_v54  ;;  %v1651_v54 = vld [vmem:[#allocation17] ss:$0 sm:$0xff] }
 0x4ed   :  { %v587_v56 = vadd.f32 %v584_v55, %v2221_v15 }
 0x4ef   :  { %v593_v57 = vsel %vm289_vm2, %v587_v56, 0.0 }
 0x4f0   :  { %594 = vadd.xlane.f32.xlu2 %v593_v57 }
 0x55b   :  { %v592_v14 = vpop.xlane.xlu0 %591 }
 0x55c   :  { %v603_v1 = vmul.f32 %v2288_v0, %v592_v14 }
 0x55e   :  { %v605_v2 = vsub.f32 %v586_v52, %v603_v1 }
 0x560   :  { %v607_v3 = vmul.f32 %v605_v2, %v605_v2 }
 0x562   :  { %v609_v15 = vsel %vm289_vm2, %v607_v3, 0.0 }
 0x563   :  { %v595_v4 = vpop.xlane.xlu2 %594  ;;  %610 = vadd.xlane.f32.xlu1 %v609_v15 }
 0x564   :  { %v604_v5 = vmul.f32 %v2288_v0, %v595_v4 }
 0x566   :  { %v606_v6 = vsub.f32 %v587_v56, %v604_v5 }
 0x568   :  { %v608_v7 = vmul.f32 %v606_v6, %v606_v6 }
 0x56a   :  { %v612_v8 = vsel %vm289_vm2, %v608_v7, 0.0 }
 0x56b   :  { %613 = vadd.xlane.f32.xlu0 %v612_v8  ;;  %v1602_v8 = vld [vmem:[%s2484_s4 + $0x18] sm:$0xff] }
 0x56c   :  { %836 = vmatpush.bf16.msrb.mxu1 %v1602_v8 }
 0x5d6   :  { %v611_v10 = vpop.xlane.xlu1 %610 }
 0x5d7   :  { %v615_v11 = vmul.f32 %v611_v10, %v2288_v0 }
 0x5d9   :  { %v617_v13 = vadd.f32 1e-05, %v615_v11  ;;  %v1601_v11 = vld [vmem:[%s2484_s4 + $0x10] sm:$0xff] }
 0x5da   :  { %837 = vmatpush.bf16.msrb.mxu1 %v1601_v11 }
 0x5db   :  { %1682 = vrsqrt.f32 %v617_v13  ;;  %vm625_vm8 = vweird.f32 %v617_v13 }
 0x5de   :  { %v614_v16 = vpop.xlane.xlu0 %613 }
 0x5df   :  { %v616_v17 = vmul.f32 %v614_v16, %v2288_v0 }
 0x5e1   :  { %v1683_v18 = vpop.eup %1682  ;;  %v618_v19 = vadd.f32 1e-05, %v616_v17 }
 0x5e2   :  { %v620_v20 = vmul.f32 %v1683_v18, %v617_v13  ;;  %vm626_vm7 = vweird.f32 %v1683_v18 }
 0x5e3   :  { %1684 = vrsqrt.f32 %v618_v19  ;;  %vm627_vm9 = vmor %vm625_vm8, %vm626_vm7  ;;  %vm635_vm11 = vweird.f32 %v618_v19 }
 0x5e4   :  { %v621_v21 = vmul.f32 %v1683_v18, %v620_v20 }
 0x5e6   :  { %v622_v23 = vmul.f32 0.5, %v621_v21 }
 0x5e8   :  { %v623_v22 = vsub.f32 1.5, %v622_v23 }
 0x5e9   :  { %v1685_v24 = vpop.eup %1684 }
 0x5ea   :  { %v624_v25 = vmul.f32 %v1683_v18, %v623_v22  ;;  %v630_v26 = vmul.f32 %v1685_v24, %v618_v19  ;;  %vm636_vm10 = vweird.f32 %v1685_v24 }
 0x5eb   :  { %vm637_vm12 = vmor %vm635_vm11, %vm636_vm10 }
 0x5ec   :  { %v631_v27 = vmul.f32 %v1685_v24, %v630_v26  ;;  %v628_v28 = vsel %vm627_vm9, %v1683_v18, %v624_v25 }
 0x5ed   :  { %v639_v32 = vmul.f32 %v628_v28, %v605_v2 }
 0x5ee   :  { %v632_v29 = vmul.f32 0.5, %v631_v27 }
 0x5ef   :  { %v644_v36 = vmul.f32 %v1648_v31, %v639_v32 }
 0x5f0   :  { %v633_v30 = vsub.f32 1.5, %v632_v29 }
 0x5f1   :  { %v649_v39 = vadd.f32 %v1649_v35, %v644_v36 }
 0x5f2   :  { %v634_v33 = vmul.f32 %v1685_v24, %v633_v30  ;;  %v1652_v30 = vld [vmem:[#allocation13] ss:$0 sm:$0xff] }
 0x5f4   :  { %v638_v34 = vsel %vm637_vm12, %v1685_v24, %v634_v33 }
 0x5f5   :  { %v640_v37 = vmul.f32 %v638_v34, %v606_v6  ;;  %v1653_v34 = vld [vmem:[#allocation14] ss:$0 sm:$0xff] }
 0x5f7   :  { %v645_v38 = vmul.f32 %v1648_v31, %v640_v37 }
 0x5f9   :  { %v650_v40 = vadd.f32 %v1649_v35, %v645_v38 }
 0x5fb   :  { %v651_v41 = vpack.c.bf16 %v650_v40, %v649_v39 }
 0x5fd   :  { %1487 = vmatmul.msk.bf16.vlgmr.msra.gmra.mxu3 %vm289_vm2, %v651_v41  ;;  %v1654_v41 = vld [vmem:[#allocation7 + $0x1] ss:$0 sm:$0xff] }
 0x680   :  { %v684_v46 = vpop.f32.mrf.mxu3 }
 0x681   :  { %v685_v48 = vadd.f32 %v1650_v47, %v684_v46 }
 0x683   :  { %v689_v51 = vmax.f32 %v685_v48, 0.0 }
 0x688   :  { %v686_v49 = vpop.f32.mrf.mxu3 }
 0x689   :  { %v687_v50 = vadd.f32 %v1650_v47, %v686_v49 }
 0x68b   :  { %v690_v52 = vmax.f32 %v687_v50, 0.0 }
 0x68d   :  { %v691_v53 = vpack.c.bf16 %v690_v52, %v689_v51 }
 0x68f   :  { %1504 = vmatmul.msk.bf16.vlgmr.msrb.gmra.mxu0 %vm728_vm13, %v691_v53 }
 0x70c   :  { %v741_v55 = vpop.f32.mrf.mxu0 }
 0x70d   :  { %v742_v56 = vadd.f32 %v1651_v54, %v741_v55 }
 0x70f   :  { %v746_v57 = vadd.f32 %v742_v56, %v649_v39 }
 0x711   :  { %v750_v58 = vsel %vm289_vm2, %v746_v57, 0.0 }
 0x712   :  { %751 = vadd.xlane.f32.xlu2 %v750_v58 }
 0x714   :  { %v743_v59 = vpop.f32.mrf.mxu0 }
 0x715   :  { %v744_v60 = vadd.f32 %v1651_v54, %v743_v59 }
 0x717   :  { %v747_v61 = vadd.f32 %v744_v60, %v650_v40 }
 0x719   :  { %v753_v62 = vsel %vm289_vm2, %v747_v61, 0.0 }
 0x71a   :  { %754 = vadd.xlane.f32.xlu0 %v753_v62 }
 0x785   :  { %v752_v63 = vpop.xlane.xlu2 %751 }
 0x786   :  { %v756_v14 = vmul.f32 %v752_v63, %v2288_v0 }
 0x788   :  { %v758_v1 = vsub.f32 %v746_v57, %v756_v14 }
 0x78a   :  { %v760_v2 = vmul.f32 %v758_v1, %v758_v1 }
 0x78c   :  { %v762_v3 = vsel %vm289_vm2, %v760_v2, 0.0 }
 0x78d   :  { %v755_v15 = vpop.xlane.xlu0 %754  ;;  %763 = vadd.xlane.f32.xlu2 %v762_v3 }
 0x78e   :  { %v757_v4 = vmul.f32 %v755_v15, %v2288_v0 }
 0x790   :  { %v759_v5 = vsub.f32 %v747_v61, %v757_v4 }
 0x792   :  { %v761_v6 = vmul.f32 %v759_v5, %v759_v5 }
 0x794   :  { %v765_v7 = vsel %vm289_vm2, %v761_v6, 0.0 }
 0x795   :  { %766 = vadd.xlane.f32.xlu1 %v765_v7 }
 0x800   :  { %v764_v9 = vpop.xlane.xlu2 %763 }
 0x801   :  { %v768_v10 = vmul.f32 %v764_v9, %v2288_v0 }
 0x803   :  { %v770_v12 = vadd.f32 1e-05, %v768_v10 }
 0x805   :  { %1686 = vrsqrt.f32 %v770_v12  ;;  %vm778_vm15 = vweird.f32 %v770_v12 }
 0x808   :  { %v767_v13 = vpop.xlane.xlu1 %766 }
 0x809   :  { %v769_v16 = vmul.f32 %v767_v13, %v2288_v0 }
 0x80b   :  { %v1687_v17 = vpop.eup %1686  ;;  %v771_v18 = vadd.f32 1e-05, %v769_v16 }
 0x80c   :  { %v773_v19 = vmul.f32 %v1687_v17, %v770_v12  ;;  %vm779_vm14 = vweird.f32 %v1687_v17 }
 0x80d   :  { %1688 = vrsqrt.f32 %v771_v18  ;;  %vm780_vm0 = vmor %vm778_vm15, %vm779_vm14  ;;  %vm788_vm6 = vweird.f32 %v771_v18 }
 0x80e   :  { %v774_v20 = vmul.f32 %v1687_v17, %v773_v19 }
 0x810   :  { %v775_v21 = vmul.f32 0.5, %v774_v20 }
 0x812   :  { %v776_v23 = vsub.f32 1.5, %v775_v21 }
 0x813   :  { %v1689_v22 = vpop.eup %1688 }
 0x814   :  { %v777_v24 = vmul.f32 %v1687_v17, %v776_v23  ;;  %v783_v25 = vmul.f32 %v1689_v22, %v771_v18  ;;  %vm789_vm1 = vweird.f32 %v1689_v22 }
 0x815   :  { %vm790_vm7 = vmor %vm788_vm6, %vm789_vm1  ;;  %vm1368_vm6 = vcmask 1041409  }
 0x816   :  { %v784_v26 = vmul.f32 %v1689_v22, %v783_v25  ;;  %v781_v27 = vsel %vm780_vm0, %v1687_v17, %v777_v24 }
 0x817   :  { %v792_v31 = vmul.f32 %v781_v27, %v758_v1 }
 0x818   :  { %v785_v28 = vmul.f32 0.5, %v784_v26 }
 0x819   :  { %v797_v35 = vmul.f32 %v1652_v30, %v792_v31 }
 0x81a   :  { %v786_v29 = vsub.f32 1.5, %v785_v28 }
 0x81b   :  { %v2330_v38 = vadd.f32 %v1653_v34, %v797_v35 }
 0x81c   :  { %v787_v32 = vmul.f32 %v1689_v22, %v786_v29 }
 0x81e   :  { %v791_v33 = vsel %vm790_vm7, %v1689_v22, %v787_v32 }
 0x81f   :  { %v793_v36 = vmul.f32 %v791_v33, %v759_v5 }
 0x821   :  { %v798_v37 = vmul.f32 %v1652_v30, %v793_v36 }
 0x823   :  { %v2332_v39 = vadd.f32 %v1653_v34, %v798_v37 }
 0x825   :  { %v804_v40 = vpack.c.bf16 %v2332_v39, %v2330_v38 }
 0x827   :  { %1517 = vmatmul.msk.bf16.vlgmr.msrb.gmra.mxu1 %vm289_vm2, %v804_v40 }
 0x8a4   :  { %v839_v42 = vpop.f32.mrf.mxu1 }
 0x8a5   :  { %v840_v43 = vadd.f32 %v1654_v41, %v839_v42 }
 0x8a7   :  { %v844_v44 = vpack.c.bf16 %v840_v43, %v840_v43 }
 0x8a9   :  { %v847_v45 = vunpack.c.l.b16 %v844_v44 }
 0x8ab   :  { %v2337_v46 = vpack.c.b16 %v847_v45, %v847_v45 }
 0x8ac   :  { %v841_v47 = vpop.f32.mrf.mxu1 }
 0x8ad   :  { %v842_v48 = vadd.f32 %v1654_v41, %v841_v47  ;;  %962 = vrot.lane.b32.xlu1 %v2337_v46, %s2032_s23  ;;  %849 = vrot.lane.b32.xlu0 %v2337_v46, %s2033_s7 }
 0x8af   :  { %v845_v49 = vpack.c.bf16 %v842_v48, %v842_v48 }
 0x8b1   :  { %v871_v50 = vunpack.c.l.b16 %v845_v49 }
 0x8b3   :  { %v2343_v51 = vpack.c.b16 %v871_v50, %v871_v50 }
 0x8b5   :  { %873 = vrot.lane.b32.xlu2 %v2343_v51, %s2033_s7  ;;  %985 = vrot.lane.b32.xlu0 %v2343_v51, %s2032_s23 }
 0x8bd   :  { %960 = vrot.lane.b32.xlu2 %v2337_v46, %s2031_s10  ;;  %983 = vrot.lane.b32.xlu0 %v2343_v51, %s2031_s10 }
 0x90f   :  { %v874_v52 = vpop.permute.xlu2 %873 }
 0x910   :  { %v879_v53 = vsel %vm314_vm3, %v874_v52, 0 }
 0x911   :  { %888 = vmatpush.bf16.xpose.msrb.mxu3 %v879_v53 }
 0x917   :  { %v961_v61 = vpop.permute.xlu2 %960 }
 0x918   :  { %1519 = vmatmul.msk.bf16.vlgmr.msrb.gmra.mxu3 %vm314_vm3, %v845_v49 }
 0x91f   :  { %v963_v54 = vpop.permute.xlu1 %962  ;;  %v850_v55 = vpop.permute.xlu0 %849 }
 0x920   :  { %v968_v56 = vsel %vm314_vm3, %v963_v54, 0  ;;  %v855_v57 = vsel %vm314_vm3, %v850_v55, 0 }
 0x921   :  { %864 = vmatpush.bf16.xpose.msrb.mxu2 %v855_v57 }
 0x927   :  { %v986_v58 = vpop.permute.xlu0 %985 }
 0x928   :  { %v991_v59 = vsel %vm314_vm3, %v986_v58, 0  ;;  %1518 = vmatmul.msk.bf16.vlgmr.msrb.gmra.mxu2 %vm314_vm3, %v844_v44 }
 0x929   :  { %977 = vmatpush.bf16.xpose.msra.mxu2 %v968_v56  ;;  %1000 = vmatpush.bf16.xpose.msra.mxu3 %v991_v59 }
 0x92f   :  { %v984_v60 = vpop.permute.xlu0 %983 }
 0x930   :  { %1523 = vmatmul.msk.bf16.vlgmr.msra.gmra.mxu3 %vm314_vm3, %v984_v60 }
 0x938   :  { %1522 = vmatmul.msk.bf16.vlgmr.msra.gmra.mxu2 %vm314_vm3, %v961_v61  ;;  %v1604_v61 = vld [vmem:[%s2458_s6 + $0x18] sm:$0xff] }
 0x939   :  { %1114 = vmatpush.bf16.msrb.mxu2 %v1604_v61  ;;  %v1610_v61 = vld [vmem:[%s2466_s14 + $0x38] sm:$0xff] }
 0x99b   :  { %v890_v62 = vpop.f32.mrf.mxu3 }
 0x99c   :  { %v897_v63 = vsel %vm358_vm4, %v890_v62, -inf }
 0x99d   :  { %898 = vmax.xlane.f32.xlu2 %v897_v63 }
 0x9a3   :  { %v892_v14 = vpop.f32.mrf.mxu3 }
 0x9ab   :  { %v866_v1 = vpop.f32.mrf.mxu2 }
 0x9ac   :  { %v894_v2 = vsel %vm358_vm4, %v866_v1, -inf }
 0x9ad   :  { %895 = vmax.xlane.f32.xlu1 %v894_v2 }
 0x9b3   :  { %v868_v3 = vpop.f32.mrf.mxu2  ;;  %v1002_v15 = vpop.f32.mrf.mxu3 }
 0x9b4   :  { %v1009_v4 = vsel %vm358_vm4, %v1002_v15, -inf  ;;  %v1603_v3 = vld [vmem:[%s2458_s6 + $0x10] sm:$0xff] }
 0x9b5   :  { %1010 = vmax.xlane.f32.xlu1 %v1009_v4  ;;  %1115 = vmatpush.bf16.msrb.mxu2 %v1603_v3 }
 0x9bb   :  { %v979_v5 = vpop.f32.mrf.mxu2  ;;  %v1004_v6 = vpop.f32.mrf.mxu3 }
 0x9bc   :  { %v1006_v7 = vsel %vm358_vm4, %v979_v5, -inf }
 0x9bd   :  { %1007 = vmax.xlane.f32.xlu0 %v1006_v7 }
 0x9c3   :  { %v981_v8 = vpop.f32.mrf.mxu2 }
 0x9ce   :  { %918 = vrot.lane.b32.xlu1 %v2337_v46, %s2029_s9 }
 0x9d6   :  { %1051 = vrot.lane.b32.xlu1 %v2343_v51, %s2034_s2 }
 0xa10   :  { %v899_v9 = vpop.xlane.xlu2 %898 }
 0xa11   :  { %v901_v10 = vsub.f32 %v890_v62, %v899_v9  ;;  %v1655_v9 = vld [vmem:[#allocation8 + $0x1] ss:$0 sm:$0xff] }
 0xa13   :  { %v904_v11 = vmul.f32 1.442695, %v901_v10 }
 0xa15   :  { %1690 = vpow2.f32 %v904_v11 }
 0xa1b   :  { %v1691_v12 = vpop.eup %1690 }
 0xa1c   :  { %v909_v13 = vsel %vm358_vm4, %v1691_v12, 0.0 }
 0xa1d   :  { %910 = vadd.xlane.f32.xlu0 %v909_v13 }
 0xa20   :  { %v896_v16 = vpop.xlane.xlu1 %895 }
 0xa21   :  { %v900_v17 = vsub.f32 %v866_v1, %v896_v16 }
 0xa23   :  { %v902_v18 = vmul.f32 1.442695, %v900_v17 }
 0xa25   :  { %1692 = vpow2.f32 %v902_v18 }
 0xa28   :  { %v1011_v21 = vpop.xlane.xlu1 %1010 }
 0xa29   :  { %v1013_v24 = vsub.f32 %v1002_v15, %v1011_v21 }
 0xa2b   :  { %v1693_v19 = vpop.eup %1692  ;;  %v1016_v26 = vmul.f32 1.442695, %v1013_v24 }
 0xa2c   :  { %v906_v20 = vsel %vm358_vm4, %v1693_v19, 0.0 }
 0xa2d   :  { %907 = vadd.xlane.f32.xlu2 %v906_v20 }
 0xa30   :  { %v1008_v23 = vpop.xlane.xlu0 %1007 }
 0xa31   :  { %v1012_v22 = vsub.f32 %v979_v5, %v1008_v23 }
 0xa33   :  { %v1014_v25 = vmul.f32 1.442695, %v1012_v22 }
 0xa35   :  { %1694 = vpow2.f32 %v1014_v25 }
 0xa36   :  { %1696 = vpow2.f32 %v1016_v26 }
 0xa3b   :  { %v1695_v27 = vpop.eup %1694 }
 0xa3c   :  { %v1018_v28 = vsel %vm358_vm4, %v1695_v27, 0.0  ;;  %v1697_v30 = vpop.eup %1696 }
 0xa3d   :  { %1019 = vadd.xlane.f32.xlu0 %v1018_v28  ;;  %v1021_v32 = vsel %vm358_vm4, %v1697_v30, 0.0 }
 0xa40   :  { %v919_v29 = vpop.permute.xlu1 %918 }
 0xa41   :  { %v924_v31 = vsel %vm388_vm5, %v919_v29, 0 }
 0xa42   :  { %933 = vmatpush.bf16.msra.mxu0 %v924_v31  ;;  %v1605_v31 = vld [vmem:[%s2464_s12 + $0x10] sm:$0xff] }
 0xa45   :  { %939 = vrot.lane.b32.xlu2 %v2343_v51, %s2029_s9  ;;  %1022 = vadd.xlane.f32.xlu0 %v1021_v32  ;;  %s1437_s9 = sshll.u32 %s2472_s20, 4  ;;  %s1438_s9 = int_to_ptr.hbm [resolvable:$true] %s1437_s9 }
 0xa48   :  { %v1052_v37 = vpop.permute.xlu1 %1051 }
 0xa49   :  { %v1057_v44 = vsel %vm388_vm5, %v1052_v37, 0 }
 0xa59   :  { %1030 = vrot.lane.b32.xlu0 %v2337_v46, %s2034_s2 }
 0xa90   :  { %v911_v33 = vpop.xlane.xlu0 %910 }
 0xa91   :  { %1698 = vrcp.f32 %v911_v33 }
 0xa97   :  { %v1699_v35 = vpop.eup %1698 }
 0xa98   :  { %v915_v40 = vmul.f32 %v1699_v35, %v1691_v12 }
 0xa9a   :  { %v917_v47 = vpack.c.bf16 %v915_v40, %v915_v40 }
 0xaa0   :  { %v908_v34 = vpop.xlane.xlu2 %907 }
 0xaa1   :  { %1700 = vrcp.f32 %v908_v34 }
 0xaa7   :  { %v1701_v36 = vpop.eup %1700 }
 0xaa8   :  { %v914_v41 = vmul.f32 %v1701_v36, %v1693_v19  ;;  %v940_v42 = vpop.permute.xlu2 %939 }
 0xaa9   :  { %v945_v43 = vsel %vm388_vm5, %v940_v42, 0 }
 0xaaa   :  { %v916_v45 = vpack.c.bf16 %v914_v41, %v914_v41  ;;  %954 = vmatpush.bf16.msra.mxu1 %v945_v43 }
 0xaac   :  { %1520 = vmatmul.msk.bf16.vlgmr.msra.gmra.mxu0 %vm358_vm4, %v916_v45 }
 0xaad   :  { %1521 = vmatmul.msk.bf16.vlgmr.msra.gmra.mxu1 %vm358_vm4, %v917_v47 }
 0xaae   :  { %1066 = vmatpush.bf16.msrb.mxu1 %v1057_v44 }
 0xab0   :  { %v1020_v46 = vpop.xlane.xlu0 %1019 }
 0xab8   :  { %v1023_v48 = vpop.xlane.xlu0 %1022 }
 0xab9   :  { %1702 = vrcp.f32 %v1023_v48 }
 0xaba   :  { %1704 = vrcp.f32 %v1020_v46 }
 0xabf   :  { %v1703_v49 = vpop.eup %1702 }
 0xac0   :  { %v1027_v50 = vmul.f32 %v1703_v49, %v1697_v30  ;;  %v1705_v52 = vpop.eup %1704 }
 0xac1   :  { %v1026_v53 = vmul.f32 %v1705_v52, %v1695_v27 }
 0xac2   :  { %v1029_v51 = vpack.c.bf16 %v1027_v50, %v1027_v50  ;;  %v1656_v50 = vld [vmem:[#allocation10 + $0x1] ss:$0 sm:$0xff] }
 0xac3   :  { %v1028_v56 = vpack.c.bf16 %v1026_v53, %v1026_v53 }
 0xac4   :  { %1525 = vmatmul.msk.bf16.vlgmr.msrb.gmra.mxu1 %vm358_vm4, %v1029_v51 }
 0xacb   :  { %v1031_v54 = vpop.permute.xlu0 %1030 }
 0xacc   :  { %v1036_v55 = vsel %vm388_vm5, %v1031_v54, 0  ;;  %v1657_v54 = vld [vmem:[#allocation11 + $0x1] ss:$0 sm:$0xff] }
 0xacd   :  { %1045 = vmatpush.bf16.msrb.mxu0 %v1036_v55 }
 0xad0   :  { %1524 = vmatmul.msk.bf16.vlgmr.msrb.gmra.mxu0 %vm358_vm4, %v1028_v56 }
 0xad1   :  { %1270 = vmatpush.bf16.msra.mxu0 %v1610_v61 }
 0xb29   :  { %v935_v57 = vpop.f32.mrf.mxu0 }
 0xb2a   :  { %v956_v58 = vpop.f32.mrf.mxu1 }
 0xb31   :  { %v937_v59 = vpop.f32.mrf.mxu0 }
 0xb32   :  { %v958_v60 = vpop.f32.mrf.mxu1 }
 0xb41   :  { %v1068_v62 = vpop.f32.mrf.mxu1 }
 0xb49   :  { %v1070_v63 = vpop.f32.mrf.mxu1 }
 0xb4a   :  { %v1608_v63 = vld [vmem:[%s2466_s14 + $0x28] sm:$0xff] }
 0xb4d   :  { %v1047_v14 = vpop.f32.mrf.mxu0 }
 0xb4e   :  { %v1640_v1 = vpack.i.bf16 %v1068_v62, %v1047_v14  ;;  %v1609_v62 = vld [vmem:[%s2466_s14 + $0x30] sm:$0xff]  ;;  %v1607_v14 = vld [vmem:[%s2466_s14 + $0x20] sm:$0xff] }
 0xb4f   :  { %1271 = vmatpush.bf16.msra.mxu0 %v1609_v62 }
 0xb50   :  { %1641 = vrot.lane.b32.xlu2 %v1640_v1, %s2018_s21 }
 0xb53   :  { %1272 = vmatpush.bf16.msra.mxu0 %v1608_v63 }
 0xb55   :  { %v1049_v2 = vpop.f32.mrf.mxu0 }
 0xb56   :  { %v1658_v2 = vld [vmem:[#allocation16 + $0x1] ss:$0 sm:$0xff] }
 0xb57   :  { %1273 = vmatpush.bf16.msra.mxu0 %v1607_v14 }
 0xbaa   :  { %v1642_v15 = vpop.permute.xlu2 %1641 }
 0xbab   :  { %v1644_v4 = vunpack.i.h.bf16 %v1642_v15  ;;  %v1643_v5 = vunpack.i.l.bf16 %v1642_v15 }
 0xbad   :  { %v1081_v6 = vsel %vm314_vm3, %v956_v58, %v1644_v4  ;;  %v1080_v7 = vsel %vm314_vm3, %v935_v57, %v1643_v5 }
 0xbae   :  { %v1082_v8 = vpack.c.bf16 %v1081_v6, %v1080_v7 }
 0xbb0   :  { %1538 = vmatmul.msk.bf16.vlgmr.msrb.gmra.mxu2 %vm289_vm2, %v1082_v8  ;;  %v1659_v8 = vld [vmem:[#allocation17 + $0x1] ss:$0 sm:$0xff] }
 0xc33   :  { %v1117_v10 = vpop.f32.mrf.mxu2 }
 0xc34   :  { %v1118_v11 = vadd.f32 %v1655_v9, %v1117_v10 }
 0xc36   :  { %v1122_v12 = vadd.f32 %v1118_v11, %v2330_v38 }
 0xc38   :  { %v1128_v13 = vsel %vm289_vm2, %v1122_v12, 0.0 }
 0xc39   :  { %1129 = vadd.xlane.f32.xlu1 %v1128_v13 }
 0xc3b   :  { %v1119_v16 = vpop.f32.mrf.mxu2 }
 0xc3c   :  { %v1120_v17 = vadd.f32 %v1655_v9, %v1119_v16 }
 0xc3e   :  { %v1123_v18 = vadd.f32 %v1120_v17, %v2332_v39  ;;  %v1606_v39 = vld [vmem:[%s2464_s12 + $0x18] sm:$0xff] }
 0xc3f   :  { %1214 = vmatpush.bf16.msrb.mxu3 %v1606_v39 }
 0xc40   :  { %v1131_v19 = vsel %vm289_vm2, %v1123_v18, 0.0 }
 0xc41   :  { %1132 = vadd.xlane.f32.xlu2 %v1131_v19 }
 0xc43   :  { %1215 = vmatpush.bf16.msrb.mxu3 %v1605_v31 }
 0xcac   :  { %v1130_v20 = vpop.xlane.xlu1 %1129 }
 0xcad   :  { %v1134_v21 = vmul.f32 %v1130_v20, %v2288_v0 }
 0xcaf   :  { %v1136_v23 = vsub.f32 %v1122_v12, %v1134_v21 }
 0xcb1   :  { %v1138_v22 = vmul.f32 %v1136_v23, %v1136_v23 }
 0xcb3   :  { %v1140_v24 = vsel %vm289_vm2, %v1138_v22, 0.0 }
 0xcb4   :  { %v1133_v25 = vpop.xlane.xlu2 %1132  ;;  %1141 = vadd.xlane.f32.xlu0 %v1140_v24 }
 0xcb5   :  { %v1135_v38 = vmul.f32 %v1133_v25, %v2288_v0 }
 0xcb7   :  { %v1137_v26 = vsub.f32 %v1123_v18, %v1135_v38 }
 0xcb9   :  { %v1139_v27 = vmul.f32 %v1137_v26, %v1137_v26 }
 0xcbb   :  { %v1143_v28 = vsel %vm289_vm2, %v1139_v27, 0.0 }
 0xcbc   :  { %1144 = vadd.xlane.f32.xlu1 %v1143_v28 }
 0xd27   :  { %v1142_v29 = vpop.xlane.xlu0 %1141 }
 0xd28   :  { %v1146_v30 = vmul.f32 %v1142_v29, %v2288_v0 }
 0xd2a   :  { %v1148_v32 = vadd.f32 1e-05, %v1146_v30 }
 0xd2c   :  { %1706 = vrsqrt.f32 %v1148_v32  ;;  %vm1156_vm5 = vweird.f32 %v1148_v32 }
 0xd2f   :  { %v1145_v33 = vpop.xlane.xlu1 %1144 }
 0xd30   :  { %v1147_v34 = vmul.f32 %v1145_v33, %v2288_v0 }
 0xd32   :  { %v1707_v35 = vpop.eup %1706  ;;  %v1149_v36 = vadd.f32 1e-05, %v1147_v34 }
 0xd33   :  { %v1151_v37 = vmul.f32 %v1707_v35, %v1148_v32  ;;  %vm1157_vm4 = vweird.f32 %v1707_v35 }
 0xd34   :  { %1708 = vrsqrt.f32 %v1149_v36  ;;  %vm1158_vm8 = vmor %vm1156_vm5, %vm1157_vm4  ;;  %vm1166_vm10 = vweird.f32 %v1149_v36 }
 0xd35   :  { %v1152_v40 = vmul.f32 %v1707_v35, %v1151_v37  ;;  %v1611_v37 = vld [vmem:[%s2468_s16] sm:$0xff] }
 0xd37   :  { %v1153_v41 = vmul.f32 0.5, %v1152_v40 }
 0xd39   :  { %v1154_v42 = vsub.f32 1.5, %v1153_v41 }
 0xd3a   :  { %v1709_v43 = vpop.eup %1708 }
 0xd3b   :  { %v1155_v44 = vmul.f32 %v1707_v35, %v1154_v42  ;;  %v1161_v45 = vmul.f32 %v1709_v43, %v1149_v36  ;;  %vm1167_vm9 = vweird.f32 %v1709_v43 }
 0xd3c   :  { %vm1168_vm11 = vmor %vm1166_vm10, %vm1167_vm9 }
 0xd3d   :  { %v1162_v47 = vmul.f32 %v1709_v43, %v1161_v45  ;;  %v1159_v46 = vsel %vm1158_vm8, %v1707_v35, %v1155_v44  ;;  %v1612_v35 = vld [vmem:[%s2468_s16 + $0x8] sm:$0xff] }
 0xd3e   :  { %v1170_v51 = vmul.f32 %v1159_v46, %v1136_v23  ;;  %1392 = vmatpush.bf16.msra.mxu1 %v1612_v35  ;;  %v1660_v44 = vld [vmem:[#allocation13 + $0x1] ss:$0 sm:$0xff]  ;;  %v1661_v46 = vld [vmem:[#allocation14 + $0x1] ss:$0 sm:$0xff] }
 0xd3f   :  { %v1163_v48 = vmul.f32 0.5, %v1162_v47 }
 0xd40   :  { %v1175_v55 = vmul.f32 %v1656_v50, %v1170_v51 }
 0xd41   :  { %v1164_v49 = vsub.f32 1.5, %v1163_v48 }
 0xd42   :  { %v1180_v58 = vadd.f32 %v1657_v54, %v1175_v55  ;;  %1393 = vmatpush.bf16.msra.mxu1 %v1611_v37 }
 0xd43   :  { %v1165_v52 = vmul.f32 %v1709_v43, %v1164_v49 }
 0xd45   :  { %v1169_v53 = vsel %vm1168_vm11, %v1709_v43, %v1165_v52 }
 0xd46   :  { %v1171_v56 = vmul.f32 %v1169_v53, %v1137_v26 }
 0xd48   :  { %v1176_v57 = vmul.f32 %v1656_v50, %v1171_v56 }
 0xd4a   :  { %v1181_v59 = vadd.f32 %v1657_v54, %v1176_v57 }
 0xd4c   :  { %v1182_v60 = vpack.c.bf16 %v1181_v59, %v1180_v58 }
 0xd4e   :  { %1551 = vmatmul.msk.bf16.vlgmr.msrb.gmra.mxu3 %vm289_vm2, %v1182_v60 }
 0xdd1   :  { %v1217_v1 = vpop.f32.mrf.mxu3 }
 0xdd2   :  { %v1218_v3 = vadd.f32 %v1658_v2, %v1217_v1 }
 0xdd4   :  { %v1222_v5 = vmax.f32 %v1218_v3, 0.0 }
 0xdd9   :  { %v1219_v15 = vpop.f32.mrf.mxu3 }
 0xdda   :  { %v1220_v4 = vadd.f32 %v1658_v2, %v1219_v15 }
 0xddc   :  { %v1223_v6 = vmax.f32 %v1220_v4, 0.0 }
 0xdde   :  { %v1224_v7 = vpack.c.bf16 %v1223_v6, %v1222_v5 }
 0xde0   :  { %1576 = vmatmul.msk.bf16.vlgmr.msra.gmra.mxu0 %vm728_vm13, %v1224_v7 }
 0xe5d   :  { %v1275_v9 = vpop.f32.mrf.mxu0 }
 0xe5e   :  { %v1276_v10 = vadd.f32 %v1659_v8, %v1275_v9 }
 0xe60   :  { %v1280_v11 = vadd.f32 %v1276_v10, %v1180_v58 }
 0xe62   :  { %v1286_v12 = vsel %vm289_vm2, %v1280_v11, 0.0 }
 0xe63   :  { %1287 = vadd.xlane.f32.xlu2 %v1286_v12 }
 0xe65   :  { %v1277_v13 = vpop.f32.mrf.mxu0 }
 0xe66   :  { %v1278_v16 = vadd.f32 %v1659_v8, %v1277_v13  ;;  %v1613_v13 = vld [vmem:[#allocation19] sm:$0xff] }
 0xe67   :  { %1423 = vmatpush.bf16.msra.mxu2 %v1613_v13 }
 0xe68   :  { %v1281_v17 = vadd.f32 %v1278_v16, %v1181_v59  ;;  %v1662_v16 = vld [vmem:[%s2469_s17] ss:$0 sm:$0xff] }
 0xe6a   :  { %v1289_v18 = vsel %vm289_vm2, %v1281_v17, 0.0 }
 0xe6b   :  { %1290 = vadd.xlane.f32.xlu1 %v1289_v18 }
 0xed6   :  { %v1288_v19 = vpop.xlane.xlu2 %1287 }
 0xed7   :  { %v1292_v20 = vmul.f32 %v1288_v19, %v2288_v0 }
 0xed9   :  { %v1294_v21 = vsub.f32 %v1280_v11, %v1292_v20 }
 0xedb   :  { %v1296_v23 = vmul.f32 %v1294_v21, %v1294_v21 }
 0xedd   :  { %v1298_v22 = vsel %vm289_vm2, %v1296_v23, 0.0  ;;  %v1663_v23 = vld [vmem:[%s2471_s19] ss:$0 sm:$0xff] }
 0xede   :  { %v1291_v24 = vpop.xlane.xlu1 %1290  ;;  %1299 = vadd.xlane.f32.xlu0 %v1298_v22 }
 0xedf   :  { %v1293_v25 = vmul.f32 %v1291_v24, %v2288_v0 }
 0xee1   :  { %v1295_v38 = vsub.f32 %v1281_v17, %v1293_v25 }
 0xee3   :  { %v1297_v26 = vmul.f32 %v1295_v38, %v1295_v38 }
 0xee5   :  { %v1301_v27 = vsel %vm289_vm2, %v1297_v26, 0.0 }
 0xee6   :  { %1302 = vadd.xlane.f32.xlu2 %v1301_v27 }
 0xf51   :  { %v1300_v28 = vpop.xlane.xlu0 %1299 }
 0xf52   :  { %v1304_v39 = vmul.f32 %v1300_v28, %v2288_v0 }
 0xf54   :  { %v1306_v29 = vadd.f32 1e-05, %v1304_v39 }
 0xf56   :  { %1710 = vrsqrt.f32 %v1306_v29  ;;  %vm1314_vm13 = vweird.f32 %v1306_v29 }
 0xf59   :  { %v1303_v30 = vpop.xlane.xlu2 %1302 }
 0xf5a   :  { %v1305_v31 = vmul.f32 %v1303_v30, %v2288_v0 }
 0xf5c   :  { %v1711_v32 = vpop.eup %1710  ;;  %v1307_v33 = vadd.f32 1e-05, %v1305_v31 }
 0xf5d   :  { %v1309_v34 = vmul.f32 %v1711_v32, %v1306_v29  ;;  %vm1315_vm12 = vweird.f32 %v1711_v32 }
 0xf5e   :  { %1712 = vrsqrt.f32 %v1307_v33  ;;  %vm1316_vm14 = vmor %vm1314_vm13, %vm1315_vm12  ;;  %vm1324_vm0 = vweird.f32 %v1307_v33 }
 0xf5f   :  { %v1310_v36 = vmul.f32 %v1711_v32, %v1309_v34 }
 0xf61   :  { %v1311_v40 = vmul.f32 0.5, %v1310_v36 }
 0xf63   :  { %v1312_v41 = vsub.f32 1.5, %v1311_v40 }
 0xf64   :  { %v1713_v42 = vpop.eup %1712 }
 0xf65   :  { %v1313_v0 = vmul.f32 %v1711_v32, %v1312_v41  ;;  %v1319_v43 = vmul.f32 %v1713_v42, %v1307_v33  ;;  %vm1325_vm15 = vweird.f32 %v1713_v42 }
 0xf66   :  { %vm1326_vm1 = vmor %vm1324_vm0, %vm1325_vm15 }
 0xf67   :  { %v1317_v45 = vsel %vm1316_vm14, %v1711_v32, %v1313_v0  ;;  %v1320_v47 = vmul.f32 %v1713_v42, %v1319_v43 }
 0xf68   :  { %v1328_v48 = vmul.f32 %v1317_v45, %v1294_v21 }
 0xf69   :  { %v1321_v49 = vmul.f32 0.5, %v1320_v47 }
 0xf6a   :  { %v1333_v50 = vmul.f32 %v1660_v44, %v1328_v48 }
 0xf6b   :  { %v1322_v51 = vsub.f32 1.5, %v1321_v49 }
 0xf6c   :  { %v1338_v52 = vadd.f32 %v1661_v46, %v1333_v50 }
 0xf6d   :  { %v1323_v53 = vmul.f32 %v1713_v42, %v1322_v51 }
 0xf6e   :  { %v1340_v54 = vsel %vm289_vm2, %v1338_v52, 0.0 }
 0xf6f   :  { %v1341_v55 = vrot.slane %v1340_v54, 4  ;;  %v1327_v56 = vsel %vm1326_vm1, %v1713_v42, %v1323_v53 }
 0xf70   :  { %v1329_v57 = vmul.f32 %v1327_v56, %v1295_v38 }
 0xf71   :  { %v1342_v58 = vadd.f32 %v1341_v55, %v1340_v54 }
 0xf72   :  { %v1334_v59 = vmul.f32 %v1660_v44, %v1329_v57 }
 0xf73   :  { %v1343_v60 = vrot.slane %v1342_v58, 2 }
 0xf74   :  { %v1339_v61 = vadd.f32 %v1661_v46, %v1334_v59 }
 0xf75   :  { %v1344_v62 = vadd.f32 %v1343_v60, %v1342_v58 }
 0xf76   :  { %v1347_v63 = vsel %vm289_vm2, %v1339_v61, 0.0 }
 0xf77   :  { %v1348_v14 = vrot.slane %v1347_v63, 4  ;;  %v1345_v2 = vrot.slane %v1344_v62, 1 }
 0xf79   :  { %v1349_v1 = vadd.f32 %v1348_v14, %v1347_v63  ;;  %v1346_v4 = vadd.f32 %v1345_v2, %v1344_v62 }
 0xf7b   :  { %v1350_v3 = vrot.slane %v1349_v1, 2  ;;  %v1354_v7 = vpack.c.bf16 %v1346_v4, %v1346_v4 }
 0xf7d   :  { %v1351_v15 = vadd.f32 %v1350_v3, %v1349_v1  ;;  %v1366_v9 = vunpack.c.l.b16 %v1354_v7 }
 0xf7f   :  { %v1352_v5 = vrot.slane %v1351_v15, 1 }
 0xf81   :  { %v1353_v6 = vadd.f32 %v1352_v5, %v1351_v15 }
 0xf83   :  { %v1355_v8 = vpack.c.bf16 %v1353_v6, %v1353_v6 }
 0xf85   :  { %v1367_v10 = vunpack.c.l.b16 %v1355_v8 }
 0xf87   :  { %v1369_v11 = vsel %vm1368_vm6, %v1367_v10, %v1366_v9 }
 0xf88   :  { %v1370_v12 = vpack.c.b16 %v1369_v11, %v1369_v11 }
 0xf8a   :  { %1585 = vmatmul.msk.bf16.vlgmr.msra.gmra.mxu1 %vm289_vm2, %v1370_v12 }
0x1007   :  { %v1395_v17 = vpop.f32.mrf.mxu1 }
0x1008   :  { %v1396_v18 = vadd.f32 %v1662_v16, %v1395_v17 }
0x100a   :  { %v1399_v19 = vmax.f32 %v1396_v18, 0.0 }
0x100c   :  { %v1400_v20 = vpack.c.bf16 %v1399_v19, %v1399_v19 }
0x100e   :  { %1590 = vmatmul.msk.bf16.vlgmr.msra.gmra.mxu2 %vm314_vm3, %v1400_v20 }
0x100f   :  { %v1397_v21 = vpop.f32.mrf.mxu1 }
0x1091   :  { %v1425_v22 = vpop.f32.mrf.mxu2 }
0x1092   :  { %v1426_v24 = vadd.f32 %v1663_v23, %v1425_v22 }
0x1094   :  { %1429 = vst [vmem:[#allocation20] sm:$0x3] %v1426_v24 }
0x1095   :  { %1440 = dma.vmem_to_hbm [thread:$0]  %s1436_s13, 32, %s1438_s9, [#allocation4]  }
0x1099   :  { %v1427_v25 = vpop.f32.mrf.mxu2 }
0x109a   :  { %2014 = dma.done.wait [#allocation4], 32  }
0x109b   :  { %2015 = vsyncadd [#allocation4], 4294967264 }
0x109c   :  { %1445 = vsyncpa [#allocation3], 1 }
0x109d   :  { %1446 = vsyncpa [#allocation6], 1 }
0x109e   :  { %1447 = vsyncpa [#allocation9], 1 }
0x109f   :  { %1448 = vsyncpa [#allocation12], 1 }
0x10a0   :  { %1449 = vsyncpa [#allocation15], 1 }
0x10a1   :  { %1450 = vsyncpa [#allocation18], 1 }
0x10a2   :  { %1451 = vsyncpa [#allocation4], 1 }

</bundles_post_ra>
